<compile_context>
chip_gen: v5e
topology: v5e:2x2
jax: 0.10.0
libtpu: 0.0.40
codegen_flags: <defaults>
</compile_context>

<pallas_src>
from functools import partial

import jax
import jax.numpy as jnp
from jax.experimental import pallas as pl
from jax.experimental.pallas import tpu as pltpu


def _round_up(x, m):
    return ((x + m - 1) // m) * m


def _pick_tm(batch):
    """Batch tile size.

    - Large batch: 256-row tiles (fills the 256-wide MXU on v6e/v7x, amortizes
      per-grid-step overhead); v5e's 128x128 MXU just loops twice.
    - Mid batch: split into >= 2 tiles so the "parallel" grid axis gives both
      v7x TensorCores work.
    - Tiny batch: single tile rounded to 16 sublanes (bf16 packs 16 rows/vreg).
    """
    if batch >= 1024:
        return 256
    if batch >= 32:
        return min(256, _round_up((batch + 1) // 2, 16))
    return _round_up(max(batch, 1), 16)


# ----------------------------- Pallas kernel -------------------------------
def mlp_kernel(x_ref, w1_ref, b1_ref, w2_ref, b2_ref, w3_ref, b3_ref, o_ref):
    """Fused 3-layer MLP forward for one batch tile.

    x arrives in f32 and is cast to bf16 in-kernel; weights are bf16;
    accumulation, bias adds and LeakyReLU are f32 (safe on v5e's VPU).
    """

    def leaky_relu(z):
        # slope 0.2 in (0, 1) => max(z, 0.2*z) == LeakyReLU(0.2)
        return jnp.maximum(z, 0.2 * z)

    x = x_ref[...].astype(jnp.bfloat16)  # (TM, d_in)

    # Layer 1: Linear(d_in -> h0) + LeakyReLU(0.2).  Dropout: identity (eval).
    h1 = jnp.dot(x, w1_ref[...], preferred_element_type=jnp.float32) + b1_ref[...]
    h1 = leaky_relu(h1)

    # Layer 2: spectral_norm(Linear(h0 -> h1)) + LeakyReLU(0.2).
    # (weight already divided by sigma in one-time parameter preprocessing)
    h2 = jnp.dot(h1.astype(jnp.bfloat16), w2_ref[...],
                 preferred_element_type=jnp.float32) + b2_ref[...]
    h2 = leaky_relu(h2)

    # Layer 3: Linear(h1 -> num_classes_padded); lane-dense (128-wide) store.
    out = jnp.dot(h2.astype(jnp.bfloat16), w3_ref[...],
                  preferred_element_type=jnp.float32) + b3_ref[...]
    o_ref[...] = out.astype(o_ref.dtype)


# ------------------------------ JAX wrapper ---------------------------------
@partial(jax.jit, static_argnames=("num_classes",))
def block_forward(x_nchw, kparams, *, num_classes):
    """x_nchw: [B, C, H, W] float32.  kparams from prepare_params().

    Returns [B, num_classes] float32.
    """
    w1, b1, w2, b2, w3p, b3p = kparams
    B = x_nchw.shape[0]
    d_in = x_nchw.shape[1] * x_nchw.shape[2] * x_nchw.shape[3]
    h0 = w1.shape[1]
    h1d = w2.shape[1]
    n_pad = w3p.shape[1]

    # Rearrange('b c h w -> b (c h w)') -- glue reshape, fused under jit.
    x2d = x_nchw.reshape(B, d_in)

    # ---- batch tiling / sublane padding --------------------------------
    TM = _pick_tm(B)
    B_pad = _round_up(B, TM)
    if B_pad != B:
        x2d = jnp.pad(x2d, ((0, B_pad - B), (0, 0)))

    grid = (B_pad // TM,)

    # Weights have a constant block index -> VMEM-resident across batch tiles;
    # Buffered(1) single-buffers them (halves their VMEM footprint).
    out = pl.pallas_call(
        mlp_kernel,
        out_shape=jax.ShapeDtypeStruct((B_pad, n_pad), jnp.float32),
        grid_spec=pltpu.PrefetchScalarGridSpec(
            num_scalar_prefetch=0,
            grid=grid,
            in_specs=[
                pl.BlockSpec((TM, d_in), lambda i: (i, 0)),        # x tile (f32)
                pl.BlockSpec((d_in, h0), lambda i: (0, 0),
                             pipeline_mode=pl.Buffered(1)),        # w1 resident
                pl.BlockSpec((1, h0), lambda i: (0, 0)),           # b1
                pl.BlockSpec((h0, h1d), lambda i: (0, 0),
                             pipeline_mode=pl.Buffered(1)),        # w2 resident
                pl.BlockSpec((1, h1d), lambda i: (0, 0)),          # b2
                pl.BlockSpec((h1d, n_pad), lambda i: (0, 0),
                             pipeline_mode=pl.Buffered(1)),        # w3 resident
                pl.BlockSpec((1, n_pad), lambda i: (0, 0)),        # b3
            ],
            out_specs=pl.BlockSpec((TM, n_pad), lambda i: (i, 0)),
        ),
        compiler_params=pltpu.CompilerParams(
            dimension_semantics=("parallel",),   # batch tiles split across TCs
        ),
    )(x2d, w1, b1, w2, b2, w3p, b3p)

    # Strip batch + class padding (fused under jit).
    return out[:B, :num_classes]


# -------------------------- parameter construction --------------------------
def spectral_normalize(w_oi, n_power_iterations=1, eps=1e-12, seed=42):
    """PyTorch-style spectral norm on a (out_features, in_features) weight.

    Done once at parameter-construction time (not in the per-forward path).
    """
    out_dim, _ = w_oi.shape
    u = jax.random.normal(jax.random.PRNGKey(seed), (out_dim,), dtype=jnp.float32)
    u = u / (jnp.linalg.norm(u) + eps)
    v = None
    for _ in range(n_power_iterations):
        v = w_oi.T @ u
        v = v / (jnp.linalg.norm(v) + eps)
        u = w_oi @ v
        u = u / (jnp.linalg.norm(u) + eps)
    sigma = u @ (w_oi @ v)
    return w_oi / sigma


def make_params(key, in_features, hidden_dims, num_classes):
    """Deterministic synthetic f32 parameters, stored as (in, out) = W_pt.T."""
    k1, k2, k3, k4, k5, k6 = jax.random.split(key, 6)

    def lin_init(kw, kb, fan_in, fan_out):
        bound = 1.0 / jnp.sqrt(fan_in)
        w_oi = jax.random.uniform(kw, (fan_out, fan_in), minval=-bound, maxval=bound,
                                  dtype=jnp.float32)
        b = jax.random.uniform(kb, (fan_out,), minval=-bound, maxval=bound,
                               dtype=jnp.float32)
        return w_oi, b

    w1_oi, b1 = lin_init(k1, k2, in_features, hidden_dims[0])
    w2_oi, b2 = lin_init(k3, k4, hidden_dims[0], hidden_dims[1])
    w3_oi, b3 = lin_init(k5, k6, hidden_dims[1], num_classes)

    # spectral_norm applied to the hidden-to-hidden Linear, once, up front.
    w2_oi = spectral_normalize(w2_oi)

    return (w1_oi.T, b1, w2_oi.T, b2, w3_oi.T, b3)


def prepare_params(raw_params):
    """One-time kernel-ready parameter pack (hoisted out of the forward path):
    bf16 weight casts, classifier head padded to 128 lanes, (1, n) f32 biases.
    """
    w1, b1, w2, b2, w3, b3 = raw_params
    n_cls = w3.shape[1]
    n_pad = _round_up(n_cls, 128)
    w3p = jnp.pad(w3, ((0, 0), (0, n_pad - n_cls)))
    b3p = jnp.pad(b3, ((0, n_pad - n_cls),))
    return (
        w1.astype(jnp.bfloat16),
        b1.reshape(1, -1).astype(jnp.float32),
        w2.astype(jnp.bfloat16),
        b2.reshape(1, -1).astype(jnp.float32),
        w3p.astype(jnp.bfloat16),
        b3p.reshape(1, -1).astype(jnp.float32),
    )


# ------------------------------- references ---------------------------------
def reference_forward_bf16(x_nchw, raw_params):
    """Reference that applies the same bf16 quantization as the kernel."""
    w1, b1, w2, b2, w3, b3 = raw_params
    B = x_nchw.shape[0]
    x = x_nchw.reshape(B, -1)
    leaky = lambda z: jnp.where(z >= 0, z, 0.2 * z)
    bf = lambda a: a.astype(jnp.bfloat16).astype(jnp.float32)
    h1 = leaky(bf(x) @ bf(w1) + b1)
    h2 = leaky(bf(h1) @ bf(w2) + b2)
    return bf(h2) @ bf(w3) + b3


def reference_forward_f32(x_nchw, raw_params):
    """Pure f32 reference (module semantics) for a sanity check."""
    w1, b1, w2, b2, w3, b3 = raw_params
    B = x_nchw.shape[0]
    x = x_nchw.reshape(B, -1)
    leaky = lambda z: jnp.where(z >= 0, z, 0.2 * z)
    h1 = leaky(x @ w1 + b1)
    h2 = leaky(h1 @ w2 + b2)
    return h2 @ w3 + b3


# --------------------------------- main --------------------------------------
if __name__ == "__main__":
    # Small, module-consistent shapes: batch=2, in_channels=3, img_size=16.
    B, C, H, W = 2, 3, 16, 16
    hidden_dims = [256, 512]
    num_classes = 10
    in_features = C * H * W  # 768

    key = jax.random.PRNGKey(0)
    kx, kp = jax.random.split(key)
    x = jax.random.normal(kx, (B, C, H, W), dtype=jnp.float32)

    raw_params = make_params(kp, in_features, hidden_dims, num_classes)
    kparams = prepare_params(raw_params)          # one-time, outside forward
    kparams = jax.block_until_ready(kparams)

    out = block_forward(x, kparams, num_classes=num_classes)
    out = jax.block_until_ready(out)
    assert out.shape == (B, num_classes)

    # Exact-path check against a reference with matching bf16 quantization.
    ref_bf16 = reference_forward_bf16(x, raw_params)
    assert jnp.allclose(out, ref_bf16, atol=2e-3, rtol=2e-3), \
        "mismatch vs bf16-matched JAX reference"

    # Loose semantic check against the full-f32 module math.
    ref_f32 = reference_forward_f32(x, raw_params)
    assert jnp.allclose(out, ref_f32, atol=5e-2, rtol=5e-2), \
        "mismatch vs f32 JAX reference"

    # TODO(synk): Dropout(p=0.05) is the inference-mode identity; training-mode
    # masks (pltpu.prng_random_bits) are intentionally not implemented.
    print("KERNEL_OK")
</pallas_src>

<mosaic_0001>
module attributes {stable_mosaic.version = 11 : i64} {
  func.func @mlp_kernel(%arg0: i32, %arg1: memref<16x768xf32, #tpu.memory_space<vmem>>, %arg2: memref<768x256xbf16, #tpu.memory_space<vmem>>, %arg3: memref<1x256xf32, #tpu.memory_space<vmem>>, %arg4: memref<256x512xbf16, #tpu.memory_space<vmem>>, %arg5: memref<1x512xf32, #tpu.memory_space<vmem>>, %arg6: memref<512x128xbf16, #tpu.memory_space<vmem>>, %arg7: memref<1x128xf32, #tpu.memory_space<vmem>>, %arg8: memref<16x128xf32, #tpu.memory_space<vmem>>) attributes {dimension_semantics = [#tpu.dimension_semantics<parallel>], iteration_bounds = array<i64: 1>, scalar_prefetch = 0 : i64, scratch_operands = 0 : i64, tpu.core_type = #tpu.core_type<tc>, window_params = [{transform_indices = @transform_0, window_bounds = array<i64: 16, 768>}, {pipeline_mode = #tpu.pipeline_mode<synchronous>, transform_indices = @transform_1, window_bounds = array<i64: 768, 256>}, {pipeline_mode = #tpu.pipeline_mode<synchronous>, transform_indices = @transform_2, window_bounds = array<i64: 1, 256>}, {pipeline_mode = #tpu.pipeline_mode<synchronous>, transform_indices = @transform_3, window_bounds = array<i64: 256, 512>}, {pipeline_mode = #tpu.pipeline_mode<synchronous>, transform_indices = @transform_4, window_bounds = array<i64: 1, 512>}, {pipeline_mode = #tpu.pipeline_mode<synchronous>, transform_indices = @transform_5, window_bounds = array<i64: 512, 128>}, {pipeline_mode = #tpu.pipeline_mode<synchronous>, transform_indices = @transform_6, window_bounds = array<i64: 1, 128>}, {transform_indices = @transform_7, window_bounds = array<i64: 16, 128>}]} {
    %c0 = arith.constant 0 : index
    %c0_0 = arith.constant 0 : index
    %0 = vector.load %arg1[%c0, %c0_0] : memref<16x768xf32, #tpu.memory_space<vmem>>, vector<16x768xf32>
    %1 = arith.truncf %0 : vector<16x768xf32> to vector<16x768xbf16>
    %c0_1 = arith.constant 0 : index
    %c0_2 = arith.constant 0 : index
    %2 = vector.load %arg2[%c0_1, %c0_2] : memref<768x256xbf16, #tpu.memory_space<vmem>>, vector<768x256xbf16>
    %cst = arith.constant dense<0.000000e+00> : vector<16x256xf32>
    %3 = tpu.matmul %1, %2, %cst {dimension_numbers = #tpu.dot_dimension_numbers<[1], [0], [0], [1], [0, 0, 1, 1], [], []>} : vector<16x768xbf16>, vector<768x256xbf16>, vector<16x256xf32> -> vector<16x256xf32>
    %c0_3 = arith.constant 0 : index
    %c0_4 = arith.constant 0 : index
    %4 = vector.load %arg3[%c0_3, %c0_4] : memref<1x256xf32, #tpu.memory_space<vmem>>, vector<1x256xf32>
    %5 = vector.broadcast %4 : vector<1x256xf32> to vector<16x256xf32>
    %6 = arith.addf %3, %5 : vector<16x256xf32>
    %cst_5 = arith.constant 2.000000e-01 : f32
    %7 = vector.broadcast %cst_5 : f32 to vector<16x256xf32>
    %8 = arith.mulf %7, %6 : vector<16x256xf32>
    %9 = arith.maximumf %6, %8 : vector<16x256xf32>
    %10 = arith.truncf %9 : vector<16x256xf32> to vector<16x256xbf16>
    %c0_6 = arith.constant 0 : index
    %c0_7 = arith.constant 0 : index
    %11 = vector.load %arg4[%c0_6, %c0_7] : memref<256x512xbf16, #tpu.memory_space<vmem>>, vector<256x512xbf16>
    %cst_8 = arith.constant dense<0.000000e+00> : vector<16x512xf32>
    %12 = tpu.matmul %10, %11, %cst_8 {dimension_numbers = #tpu.dot_dimension_numbers<[1], [0], [0], [1], [0, 0, 1, 1], [], []>} : vector<16x256xbf16>, vector<256x512xbf16>, vector<16x512xf32> -> vector<16x512xf32>
    %c0_9 = arith.constant 0 : index
    %c0_10 = arith.constant 0 : index
    %13 = vector.load %arg5[%c0_9, %c0_10] : memref<1x512xf32, #tpu.memory_space<vmem>>, vector<1x512xf32>
    %14 = vector.broadcast %13 : vector<1x512xf32> to vector<16x512xf32>
    %15 = arith.addf %12, %14 : vector<16x512xf32>
    %cst_11 = arith.constant 2.000000e-01 : f32
    %16 = vector.broadcast %cst_11 : f32 to vector<16x512xf32>
    %17 = arith.mulf %16, %15 : vector<16x512xf32>
    %18 = arith.maximumf %15, %17 : vector<16x512xf32>
    %19 = arith.truncf %18 : vector<16x512xf32> to vector<16x512xbf16>
    %c0_12 = arith.constant 0 : index
    %c0_13 = arith.constant 0 : index
    %20 = vector.load %arg6[%c0_12, %c0_13] : memref<512x128xbf16, #tpu.memory_space<vmem>>, vector<512x128xbf16>
    %cst_14 = arith.constant dense<0.000000e+00> : vector<16x128xf32>
    %21 = tpu.matmul %19, %20, %cst_14 {dimension_numbers = #tpu.dot_dimension_numbers<[1], [0], [0], [1], [0, 0, 1, 1], [], []>} : vector<16x512xbf16>, vector<512x128xbf16>, vector<16x128xf32> -> vector<16x128xf32>
    %c0_15 = arith.constant 0 : index
    %c0_16 = arith.constant 0 : index
    %22 = vector.load %arg7[%c0_15, %c0_16] : memref<1x128xf32, #tpu.memory_space<vmem>>, vector<1x128xf32>
    %23 = vector.broadcast %22 : vector<1x128xf32> to vector<16x128xf32>
    %24 = arith.addf %21, %23 : vector<16x128xf32>
    %c0_17 = arith.constant 0 : index
    %c0_18 = arith.constant 0 : index
    %25 = vector.load %arg8[%c0_17, %c0_18] : memref<16x128xf32, #tpu.memory_space<vmem>>, vector<16x128xf32>
    tpu.vector_store %arg8[%c0_17, %c0_18], %24 {strides = array<i32>} : memref<16x128xf32, #tpu.memory_space<vmem>>, vector<16x128xf32>,
    return
  }
  func.func @transform_0(%arg0: i32) -> (i32, i32) {
    %c0_i32 = arith.constant 0 : i32
    %c0_i32_0 = arith.constant 0 : i32
    return %arg0, %c0_i32 : i32, i32
  }
  func.func @transform_1(%arg0: i32) -> (i32, i32) {
    %c0_i32 = arith.constant 0 : i32
    %c0_i32_0 = arith.constant 0 : i32
    %c0_i32_1 = arith.constant 0 : i32
    return %c0_i32, %c0_i32_0 : i32, i32
  }
  func.func @transform_2(%arg0: i32) -> (i32, i32) {
    %c0_i32 = arith.constant 0 : i32
    %c0_i32_0 = arith.constant 0 : i32
    %c0_i32_1 = arith.constant 0 : i32
    return %c0_i32, %c0_i32_0 : i32, i32
  }
  func.func @transform_3(%arg0: i32) -> (i32, i32) {
    %c0_i32 = arith.constant 0 : i32
    %c0_i32_0 = arith.constant 0 : i32
    %c0_i32_1 = arith.constant 0 : i32
    return %c0_i32, %c0_i32_0 : i32, i32
  }
  func.func @transform_4(%arg0: i32) -> (i32, i32) {
    %c0_i32 = arith.constant 0 : i32
    %c0_i32_0 = arith.constant 0 : i32
    %c0_i32_1 = arith.constant 0 : i32
    return %c0_i32, %c0_i32_0 : i32, i32
  }
  func.func @transform_5(%arg0: i32) -> (i32, i32) {
    %c0_i32 = arith.constant 0 : i32
    %c0_i32_0 = arith.constant 0 : i32
    %c0_i32_1 = arith.constant 0 : i32
    return %c0_i32, %c0_i32_0 : i32, i32
  }
  func.func @transform_6(%arg0: i32) -> (i32, i32) {
    %c0_i32 = arith.constant 0 : i32
    %c0_i32_0 = arith.constant 0 : i32
    %c0_i32_1 = arith.constant 0 : i32
    return %c0_i32, %c0_i32_0 : i32, i32
  }
  func.func @transform_7(%arg0: i32) -> (i32, i32) {
    %c0_i32 = arith.constant 0 : i32
    %c0_i32_0 = arith.constant 0 : i32
    return %arg0, %c0_i32 : i32, i32
  }
}

</mosaic_0001>

<bundles_post_ra>
// kernel: block_forward.1
= control target key start
LH: loop header
LB: loop body
LE: loop exit
PB: predicated region body
PF: predicated region fallthrough
CT: control target
= control target key end

     0   :  { %12 = vsyncpa [#allocation3], 0  ;;  %s2884_s0 = inlined_call_operand.vmem [shape: f32[16,768], index: 0, kind: input, shape index: {}]   ;;  %s2885_s1 = inlined_call_operand.hbm [shape: bf16[768,256], index: 1, kind: input, shape index: {}]   ;;  %s2886_s2 = inlined_call_operand.vmem [shape: f32[1,256], index: 2, kind: input, shape index: {}]   ;;  %s2887_s3 = inlined_call_operand.hbm [shape: bf16[256,512], index: 3, kind: input, shape index: {}]   ;;  %s2888_s4 = inlined_call_operand.vmem [shape: f32[1,512], index: 4, kind: input, shape index: {}]   ;;  %s2889_s5 = inlined_call_operand.hbm [shape: bf16[512,128], index: 5, kind: input, shape index: {}]   ;;  %s2890_s6 = inlined_call_operand.vmem [shape: f32[1,128], index: 6, kind: input, shape index: {}]   ;;  %s2891_s7 = inlined_call_operand.vmem [shape: f32[16,128], index: 7, kind: output, shape index: {}]  }
   0x1   :  { %13 = vsyncpa [#allocation5], 0  ;;  %s35_s26 = sshll.u32 %s2887_s3, 4  ;;  %s2747_s27 = smov [#allocation4]   ;;  %s36_s26 = int_to_ptr.hbm [resolvable:$true] %s35_s26 }
   0x2   :  { %s37_s28 = sshll.u32 %s2747_s27, 4  ;;  %s20_s8 = sshll.u32 %s2885_s1, 4  ;;  %s38_s28 = int_to_ptr.vmem [resolvable:$true] %s37_s28  ;;  %s21_s8 = int_to_ptr.hbm [resolvable:$true] %s20_s8 }
   0x3   :  { %s2748_s9 = smov 256   ;;  %s2749_s10 = smov 16  }
   0x4   :  { %43 = dma.hbm_to_vmem [thread:$0]  %s36_s26, 8192, %s38_s28, [#allocation5], %s2748_s9, %s2748_s9, %s2749_s10  }
   0x5   :  { %s2750_s11 = smov [#allocation2]   ;;  %s2751_s13 = smov 128  }
   0x6   :  { %s22_s12 = sshll.u32 %s2750_s11, 4  ;;  %s2752_s14 = smov 8   ;;  %s23_s12 = int_to_ptr.vmem [resolvable:$true] %s22_s12 }
   0x7   :  { %28 = dma.hbm_to_vmem [thread:$0]  %s21_s8, 12288, %s23_s12, [#allocation3], %s2751_s13, %s2751_s13, %s2752_s14  }
   0x8   :  { %s50_s16 = sshll.u32 %s2889_s5, 4  ;;  %s2753_s17 = smov [#allocation6]   ;;  %s51_s16 = int_to_ptr.hbm [resolvable:$true] %s50_s16 }
   0x9   :  { %s52_s18 = sshll.u32 %s2753_s17, 4  ;;  %s2754_s19 = smov 64   ;;  %s53_s18 = int_to_ptr.vmem [resolvable:$true] %s52_s18 }
   0xa   :  { %s2755_s1 = smov 4  }
   0xb   :  { %58 = dma.hbm_to_vmem [thread:$0]  %s51_s16, 4096, %s53_s18, [#allocation5], %s2754_s19, %s2754_s19, %s2755_s1  }
   0xc   :  { %2743 = dma.done.wait [#allocation3], 12288  }
   0xd   :  { %2744 = vsyncadd [#allocation3], 4294955008 }
   0xe   :  { %2745 = dma.done.wait [#allocation5], 12288  }
   0xf   :  { %2746 = vsyncadd [#allocation5], 4294955008  ;;  %v1759_v0 = vld [vmem:[#allocation2 + $0x70] sm:$0xf]  ;;  %v2484_v1 = vld [vmem:[#allocation2 + $0x74] sm:$0xf0] }
  0x10   :  { %v1823_v2 = vld [vmem:[#allocation2 + $0xf0] sm:$0xf]  ;;  %v1760_v3 = vor.u32 %v2484_v1, %v1759_v0  ;;  %v2500_v4 = vld [vmem:[#allocation2 + $0xf4] sm:$0xf0]  ;;  %v1751_v11 = vld [vmem:[#allocation2 + $0x60] sm:$0xf] }
  0x11   :  { %v1887_v5 = vld [vmem:[#allocation2 + $0x170] sm:$0xf]  ;;  %v2516_v6 = vld [vmem:[#allocation2 + $0x174] sm:$0xf0]  ;;  %v1824_v7 = vor.u32 %v2500_v4, %v1823_v2  ;;  %v2482_v13 = vld [vmem:[#allocation2 + $0x64] sm:$0xf0] }
  0x12   :  { %v1888_v8 = vor.u32 %v2516_v6, %v1887_v5  ;;  %v1951_v9 = vld [vmem:[#allocation2 + $0x1f0] sm:$0xf]  ;;  %v2532_v10 = vld [vmem:[#allocation2 + $0x1f4] sm:$0xf0]  ;;  %673 = vmatpush.bf16.msra.mxu0 %v1760_v3  ;;  %v1815_v14 = vld [vmem:[#allocation2 + $0xe0] sm:$0xf]  ;;  %v1752_v16 = vor.u32 %v2482_v13, %v1751_v11 }
  0x13   :  { %v1952_v12 = vor.u32 %v2532_v10, %v1951_v9  ;;  %v2498_v15 = vld [vmem:[#allocation2 + $0xe4] sm:$0xf0]  ;;  %687 = vmatpush.bf16.msra.mxu1 %v1824_v7  ;;  %v1879_v18 = vld [vmem:[#allocation2 + $0x160] sm:$0xf]  ;;  %v1743_v23 = vld [vmem:[#allocation2 + $0x50] sm:$0xf] }
  0x14   :  { %701 = vmatpush.bf16.msra.mxu2 %v1888_v8  ;;  %v1816_v17 = vor.u32 %v2498_v15, %v1815_v14  ;;  %v2514_v19 = vld [vmem:[#allocation2 + $0x164] sm:$0xf0]  ;;  %v1943_v20 = vld [vmem:[#allocation2 + $0x1e0] sm:$0xf]  ;;  %v2480_v24 = vld [vmem:[#allocation2 + $0x54] sm:$0xf0] }
  0x15   :  { %715 = vmatpush.bf16.msra.mxu3 %v1952_v12  ;;  %v1880_v21 = vor.u32 %v2514_v19, %v1879_v18  ;;  %v2530_v22 = vld [vmem:[#allocation2 + $0x1e4] sm:$0xf0]  ;;  %v1807_v26 = vld [vmem:[#allocation2 + $0xd0] sm:$0xf]  ;;  %v2496_v27 = vld [vmem:[#allocation2 + $0xd4] sm:$0xf0]  ;;  %v1744_v29 = vor.u32 %v2480_v24, %v1743_v23 }
  0x16   :  { %v1944_v25 = vor.u32 %v2530_v22, %v1943_v20  ;;  %v1871_v28 = vld [vmem:[#allocation2 + $0x150] sm:$0xf]  ;;  %674 = vmatpush.bf16.msra.mxu0 %v1752_v16  ;;  %v2512_v30 = vld [vmem:[#allocation2 + $0x154] sm:$0xf0]  ;;  %v1808_v33 = vor.u32 %v2496_v27, %v1807_v26  ;;  %v1735_v35 = vld [vmem:[#allocation2 + $0x40] sm:$0xf] }
  0x17   :  { %v1935_v31 = vld [vmem:[#allocation2 + $0x1d0] sm:$0xf]  ;;  %v2528_v32 = vld [vmem:[#allocation2 + $0x1d4] sm:$0xf0]  ;;  %688 = vmatpush.bf16.msra.mxu1 %v1816_v17  ;;  %v1872_v34 = vor.u32 %v2512_v30, %v1871_v28  ;;  %v2478_v36 = vld [vmem:[#allocation2 + $0x44] sm:$0xf0] }
  0x18   :  { %702 = vmatpush.bf16.msra.mxu2 %v1880_v21  ;;  %v1799_v37 = vld [vmem:[#allocation2 + $0xc0] sm:$0xf]  ;;  %v1936_v38 = vor.u32 %v2528_v32, %v1935_v31  ;;  %v2494_v39 = vld [vmem:[#allocation2 + $0xc4] sm:$0xf0]  ;;  %v1736_v44 = vor.u32 %v2478_v36, %v1735_v35  ;;  %v1727_v47 = vld [vmem:[#allocation2 + $0x30] sm:$0xf] }
  0x19   :  { %716 = vmatpush.bf16.msra.mxu3 %v1944_v25  ;;  %v1863_v40 = vld [vmem:[#allocation2 + $0x140] sm:$0xf]  ;;  %v2510_v41 = vld [vmem:[#allocation2 + $0x144] sm:$0xf0]  ;;  %v1800_v45 = vor.u32 %v2494_v39, %v1799_v37  ;;  %v2476_v48 = vld [vmem:[#allocation2 + $0x34] sm:$0xf0] }
  0x1a   :  { %v1927_v42 = vld [vmem:[#allocation2 + $0x1c0] sm:$0xf]  ;;  %v2526_v43 = vld [vmem:[#allocation2 + $0x1c4] sm:$0xf0]  ;;  %675 = vmatpush.bf16.msra.mxu0 %v1744_v29  ;;  %v1864_v46 = vor.u32 %v2510_v41, %v1863_v40  ;;  %v1791_v49 = vld [vmem:[#allocation2 + $0xb0] sm:$0xf]  ;;  %v1728_v56 = vor.u32 %v2476_v48, %v1727_v47 }
  0x1b   :  { %689 = vmatpush.bf16.msra.mxu1 %v1808_v33  ;;  %v1928_v50 = vor.u32 %v2526_v43, %v1927_v42  ;;  %v2492_v51 = vld [vmem:[#allocation2 + $0xb4] sm:$0xf0]  ;;  %v1855_v52 = vld [vmem:[#allocation2 + $0x130] sm:$0xf]  ;;  %v1719_v59 = vld [vmem:[#allocation2 + $0x20] sm:$0xf] }
  0x1c   :  { %703 = vmatpush.bf16.msra.mxu2 %v1872_v34  ;;  %v2508_v53 = vld [vmem:[#allocation2 + $0x134] sm:$0xf0]  ;;  %v1919_v54 = vld [vmem:[#allocation2 + $0x1b0] sm:$0xf]  ;;  %v1792_v57 = vor.u32 %v2492_v51, %v1791_v49  ;;  %v2474_v60 = vld [vmem:[#allocation2 + $0x24] sm:$0xf0] }
  0x1d   :  { %717 = vmatpush.bf16.msra.mxu3 %v1936_v38  ;;  %v2524_v55 = vld [vmem:[#allocation2 + $0x1b4] sm:$0xf0]  ;;  %v1856_v58 = vor.u32 %v2508_v53, %v1855_v52  ;;  %v1783_v61 = vld [vmem:[#allocation2 + $0xa0] sm:$0xf]  ;;  %v2490_v63 = vld [vmem:[#allocation2 + $0xa4] sm:$0xf0]  ;;  %v1720_v4 = vor.u32 %v2474_v60, %v1719_v59 }
  0x1e   :  { %676 = vmatpush.bf16.msra.mxu0 %v1736_v44  ;;  %v1920_v62 = vor.u32 %v2524_v55, %v1919_v54  ;;  %v1847_v0 = vld [vmem:[#allocation2 + $0x120] sm:$0xf]  ;;  %v2506_v1 = vld [vmem:[#allocation2 + $0x124] sm:$0xf0]  ;;  %v1784_v5 = vor.u32 %v2490_v63, %v1783_v61  ;;  %v1711_v7 = vld [vmem:[#allocation2 + $0x10] sm:$0xf] }
  0x1f   :  { %690 = vmatpush.bf16.msra.mxu1 %v1800_v45  ;;  %v1911_v2 = vld [vmem:[#allocation2 + $0x1a0] sm:$0xf]  ;;  %v2522_v3 = vld [vmem:[#allocation2 + $0x1a4] sm:$0xf0]  ;;  %v1848_v6 = vor.u32 %v2506_v1, %v1847_v0  ;;  %v2472_v8 = vld [vmem:[#allocation2 + $0x14] sm:$0xf0] }
  0x20   :  { %704 = vmatpush.bf16.msra.mxu2 %v1864_v46  ;;  %v1775_v9 = vld [vmem:[#allocation2 + $0x90] sm:$0xf]  ;;  %v1912_v10 = vor.u32 %v2522_v3, %v1911_v2  ;;  %v2488_v11 = vld [vmem:[#allocation2 + $0x94] sm:$0xf0]  ;;  %v1712_v16 = vor.u32 %v2472_v8, %v1711_v7  ;;  %v1703_v17 = vld [vmem:[#allocation2] sm:$0xf] }
  0x21   :  { %718 = vmatpush.bf16.msra.mxu3 %v1928_v50  ;;  %v1839_v12 = vld [vmem:[#allocation2 + $0x110] sm:$0xf]  ;;  %v2504_v13 = vld [vmem:[#allocation2 + $0x114] sm:$0xf0]  ;;  %v2470_v18 = vld [vmem:[#allocation2 + $0x4] sm:$0xf0]  ;;  %v1776_v19 = vor.u32 %v2488_v11, %v1775_v9 }
  0x22   :  { %677 = vmatpush.bf16.msra.mxu0 %v1728_v56  ;;  %v1903_v14 = vld [vmem:[#allocation2 + $0x190] sm:$0xf]  ;;  %v2520_v15 = vld [vmem:[#allocation2 + $0x194] sm:$0xf0]  ;;  %v1840_v20 = vor.u32 %v2504_v13, %v1839_v12  ;;  %v1767_v21 = vld [vmem:[#allocation2 + $0x80] sm:$0xf]  ;;  %v1704_v31 = vor.u32 %v2470_v18, %v1703_v17 }
  0x23   :  { %691 = vmatpush.bf16.msra.mxu1 %v1792_v57  ;;  %v2486_v22 = vld [vmem:[#allocation2 + $0x84] sm:$0xf0]  ;;  %v1831_v23 = vld [vmem:[#allocation2 + $0x100] sm:$0xf]  ;;  %v1904_v24 = vor.u32 %v2520_v15, %v1903_v14  ;;  %v2015_v28 = vld [vmem:[#allocation2 + $0x270] sm:$0xf] }
  0x24   :  { %705 = vmatpush.bf16.msra.mxu2 %v1856_v58  ;;  %v2502_v25 = vld [vmem:[#allocation2 + $0x104] sm:$0xf0]  ;;  %v1895_v26 = vld [vmem:[#allocation2 + $0x180] sm:$0xf]  ;;  %v2548_v29 = vld [vmem:[#allocation2 + $0x274] sm:$0xf0]  ;;  %v1768_v35 = vor.u32 %v2486_v22, %v1767_v21 }
  0x25   :  { %719 = vmatpush.bf16.msra.mxu3 %v1920_v62  ;;  %v2518_v27 = vld [vmem:[#allocation2 + $0x184] sm:$0xf0]  ;;  %v2079_v30 = vld [vmem:[#allocation2 + $0x2f0] sm:$0xf]  ;;  %v2564_v32 = vld [vmem:[#allocation2 + $0x2f4] sm:$0xf0]  ;;  %v1832_v36 = vor.u32 %v2502_v25, %v1831_v23  ;;  %v2016_v40 = vor.u32 %v2548_v29, %v2015_v28 }
  0x26   :  { %678 = vmatpush.bf16.msra.mxu0 %v1720_v4  ;;  %v2483_v33 = vld [vmem:[#allocation2 + $0x74] sm:$0xf]  ;;  %v1761_v34 = vld [vmem:[#allocation2 + $0x78] sm:$0xf0]  ;;  %v1896_v39 = vor.u32 %v2518_v27, %v1895_v26  ;;  %v2007_v41 = vld [vmem:[#allocation2 + $0x260] sm:$0xf]  ;;  %v2080_v42 = vor.u32 %v2564_v32, %v2079_v30 }
  0x27   :  { %692 = vmatpush.bf16.msra.mxu1 %v1784_v5  ;;  %v2499_v37 = vld [vmem:[#allocation2 + $0xf4] sm:$0xf]  ;;  %v1825_v38 = vld [vmem:[#allocation2 + $0xf8] sm:$0xf0]  ;;  %v1764_v43 = vor.u32 %v2483_v33, %v1761_v34  ;;  %v2546_v44 = vld [vmem:[#allocation2 + $0x264] sm:$0xf0] }
  0x28   :  { %706 = vmatpush.bf16.msra.mxu2 %v1848_v6  ;;  %v2071_v45 = vld [vmem:[#allocation2 + $0x2e0] sm:$0xf]  ;;  %v2562_v46 = vld [vmem:[#allocation2 + $0x2e4] sm:$0xf0]  ;;  %v1828_v47 = vor.u32 %v2499_v37, %v1825_v38  ;;  %v2481_v48 = vld [vmem:[#allocation2 + $0x64] sm:$0xf]  ;;  %v2008_v54 = vor.u32 %v2546_v44, %v2007_v41 }
  0x29   :  { %720 = vmatpush.bf16.msra.mxu3 %v1912_v10  ;;  %v1753_v49 = vld [vmem:[#allocation2 + $0x68] sm:$0xf0]  ;;  %v2497_v50 = vld [vmem:[#allocation2 + $0xe4] sm:$0xf]  ;;  %v79_v53 = vld [vmem:[%s2884_s0 + $0x30] sm:$0xff]  ;;  %v2072_v59 = vor.u32 %v2562_v46, %v2071_v45 }
  0x2a   :  { %679 = vmatpush.bf16.msra.mxu0 %v1712_v16  ;;  %v1817_v51 = vld [vmem:[#allocation2 + $0xe8] sm:$0xf0]  ;;  %v73_v52 = vld [vmem:[%s2884_s0] sm:$0xff]  ;;  %v1999_v55 = vld [vmem:[#allocation2 + $0x250] sm:$0xf]  ;;  %v1756_v60 = vor.u32 %v2481_v48, %v1753_v49 }
  0x2b   :  { %693 = vmatpush.bf16.msra.mxu1 %v1776_v19  ;;  %v2544_v56 = vld [vmem:[#allocation2 + $0x254] sm:$0xf0]  ;;  %v2063_v57 = vld [vmem:[#allocation2 + $0x2d0] sm:$0xf]  ;;  %v2811_v58 = vpack.c.bf16 %v79_v53, %v73_v52  ;;  %v2479_v62 = vld [vmem:[#allocation2 + $0x54] sm:$0xf]  ;;  %v1820_v0 = vor.u32 %v2497_v50, %v1817_v51 }
  0x2c   :  { %707 = vmatpush.bf16.msra.mxu2 %v1840_v20  ;;  %v2560_v61 = vld [vmem:[#allocation2 + $0x2d4] sm:$0xf0]  ;;  %v1745_v63 = vld [vmem:[#allocation2 + $0x58] sm:$0xf0]  ;;  %v2495_v1 = vld [vmem:[#allocation2 + $0xd4] sm:$0xf]  ;;  %v2000_v8 = vor.u32 %v2544_v56, %v1999_v55 }
  0x2d   :  { %721 = vmatpush.bf16.msra.mxu3 %v1904_v24  ;;  %v74_v2 = vld [vmem:[%s2884_s0 + $0x8] sm:$0xff]  ;;  %v80_v3 = vld [vmem:[%s2884_s0 + $0x38] sm:$0xff]  ;;  %v75_v6 = vld [vmem:[%s2884_s0 + $0x10] sm:$0xff]  ;;  %v2064_v12 = vor.u32 %v2560_v61, %v2063_v57  ;;  %v1748_v13 = vor.u32 %v2479_v62, %v1745_v63 }
  0x2e   :  { %680 = vmatpush.bf16.msra.mxu0 %v1704_v31  ;;  %v1809_v4 = vld [vmem:[#allocation2 + $0xd8] sm:$0xf0]  ;;  %v2820_v5 = vpack.c.bf16 %v80_v3, %v74_v2  ;;  %v81_v7 = vld [vmem:[%s2884_s0 + $0x40] sm:$0xff]  ;;  %v2542_v10 = vld [vmem:[#allocation2 + $0x244] sm:$0xf0] }
  0x2f   :  { %694 = vmatpush.bf16.msra.mxu1 %v1768_v35  ;;  %v1991_v9 = vld [vmem:[#allocation2 + $0x240] sm:$0xf]  ;;  %v2828_v11 = vpack.c.bf16 %v81_v7, %v75_v6  ;;  %v2558_v15 = vld [vmem:[#allocation2 + $0x2c4] sm:$0xf0]  ;;  %v2477_v16 = vld [vmem:[#allocation2 + $0x44] sm:$0xf]  ;;  %v1812_v17 = vor.u32 %v2495_v1, %v1809_v4 }
  0x30   :  { %708 = vmatpush.bf16.msra.mxu2 %v1832_v36  ;;  %v2055_v14 = vld [vmem:[#allocation2 + $0x2c0] sm:$0xf]  ;;  %v1737_v18 = vld [vmem:[#allocation2 + $0x48] sm:$0xf0]  ;;  %v76_v19 = vld [vmem:[%s2884_s0 + $0x18] sm:$0xff]  ;;  %v1992_v24 = vor.u32 %v2542_v10, %v1991_v9 }
  0x31   :  { %722 = vmatpush.bf16.msra.mxu3 %v1896_v39  ;;  %681 = vmatmul.bf16.vlgmr.msra.gmra.mxu0 %v2811_v58  ;;  %v82_v20 = vld [vmem:[%s2884_s0 + $0x48] sm:$0xff]  ;;  %v2493_v21 = vld [vmem:[#allocation2 + $0xc4] sm:$0xf]  ;;  %v2056_v25 = vor.u32 %v2558_v15, %v2055_v14  ;;  %v1740_v26 = vor.u32 %v2477_v16, %v1737_v18  ;;  %v1983_v27 = vld [vmem:[#allocation2 + $0x230] sm:$0xf] }
  0x32   :  { %729 = vmatpush.bf16.msrb.mxu0 %v2016_v40  ;;  %695 = vmatmul.bf16.vlgmr.msra.gmra.mxu1 %v2820_v5  ;;  %v1801_v22 = vld [vmem:[#allocation2 + $0xc8] sm:$0xf0]  ;;  %v2838_v23 = vpack.c.bf16 %v82_v20, %v76_v19  ;;  %v2540_v28 = vld [vmem:[#allocation2 + $0x234] sm:$0xf0]  ;;  %v2047_v29 = vld [vmem:[#allocation2 + $0x2b0] sm:$0xf] }
  0x33   :  { %743 = vmatpush.bf16.msrb.mxu1 %v2080_v42  ;;  %709 = vmatmul.bf16.vlgmr.msra.gmra.mxu2 %v2828_v11  ;;  %v1804_v30 = vor.u32 %v2493_v21, %v1801_v22  ;;  %v2556_v31 = vld [vmem:[#allocation2 + $0x2b4] sm:$0xf0]  ;;  %v2475_v32 = vld [vmem:[#allocation2 + $0x34] sm:$0xf]  ;;  %v1729_v33 = vld [vmem:[#allocation2 + $0x38] sm:$0xf0]  ;;  %v1984_v36 = vor.u32 %v2540_v28, %v1983_v27 }
  0x34   :  { %757 = vmatpush.bf16.msrb.mxu2 %v1764_v43  ;;  %v2491_v34 = vld [vmem:[#allocation2 + $0xb4] sm:$0xf]  ;;  %v1793_v35 = vld [vmem:[#allocation2 + $0xb8] sm:$0xf0]  ;;  %723 = vmatmul.bf16.vlgmr.msra.gmra.mxu3 %v2838_v23  ;;  %v2048_v37 = vor.u32 %v2556_v31, %v2047_v29  ;;  %v1732_v38 = vor.u32 %v2475_v32, %v1729_v33  ;;  %v1975_v39 = vld [vmem:[#allocation2 + $0x220] sm:$0xf] }
  0x35   :  { %771 = vmatpush.bf16.msrb.mxu3 %v1828_v47  ;;  %v2538_v40 = vld [vmem:[#allocation2 + $0x224] sm:$0xf0]  ;;  %v2039_v41 = vld [vmem:[#allocation2 + $0x2a0] sm:$0xf]  ;;  %v1796_v42 = vor.u32 %v2491_v34, %v1793_v35  ;;  %v2473_v44 = vld [vmem:[#allocation2 + $0x24] sm:$0xf] }
  0x36   :  { %730 = vmatpush.bf16.msrb.mxu0 %v2008_v54  ;;  %v2554_v43 = vld [vmem:[#allocation2 + $0x2a4] sm:$0xf0]  ;;  %v1721_v45 = vld [vmem:[#allocation2 + $0x28] sm:$0xf0]  ;;  %v2489_v46 = vld [vmem:[#allocation2 + $0xa4] sm:$0xf]  ;;  %v1976_v48 = vor.u32 %v2538_v40, %v1975_v39 }
  0x37   :  { %744 = vmatpush.bf16.msrb.mxu1 %v2072_v59  ;;  %v1785_v47 = vld [vmem:[#allocation2 + $0xa8] sm:$0xf0]  ;;  %v2040_v49 = vor.u32 %v2554_v43, %v2039_v41  ;;  %v1724_v50 = vor.u32 %v2473_v44, %v1721_v45  ;;  %v1967_v51 = vld [vmem:[#allocation2 + $0x210] sm:$0xf]  ;;  %v2536_v52 = vld [vmem:[#allocation2 + $0x214] sm:$0xf0] }
  0x38   :  { %758 = vmatpush.bf16.msrb.mxu2 %v1756_v60  ;;  %v2031_v53 = vld [vmem:[#allocation2 + $0x290] sm:$0xf]  ;;  %v1788_v54 = vor.u32 %v2489_v46, %v1785_v47  ;;  %v2552_v55 = vld [vmem:[#allocation2 + $0x294] sm:$0xf0]  ;;  %v2471_v56 = vld [vmem:[#allocation2 + $0x14] sm:$0xf]  ;;  %v1968_v61 = vor.u32 %v2536_v52, %v1967_v51 }
  0x39   :  { %772 = vmatpush.bf16.msrb.mxu3 %v1820_v0  ;;  %v1713_v57 = vld [vmem:[#allocation2 + $0x18] sm:$0xf0]  ;;  %v2487_v59 = vld [vmem:[#allocation2 + $0x94] sm:$0xf]  ;;  %v1959_v62 = vld [vmem:[#allocation2 + $0x200] sm:$0xf]  ;;  %v2032_v1 = vor.u32 %v2552_v55, %v2031_v53 }
  0x3a   :  { %731 = vmatpush.bf16.msrb.mxu0 %v2000_v8  ;;  %v1777_v60 = vld [vmem:[#allocation2 + $0x98] sm:$0xf0]  ;;  %v2534_v63 = vld [vmem:[#allocation2 + $0x204] sm:$0xf0]  ;;  %v2023_v0 = vld [vmem:[#allocation2 + $0x280] sm:$0xf]  ;;  %v1716_v2 = vor.u32 %v2471_v56, %v1713_v57 }
  0x3b   :  { %745 = vmatpush.bf16.msrb.mxu1 %v2064_v12  ;;  %v2550_v3 = vld [vmem:[#allocation2 + $0x284] sm:$0xf0]  ;;  %v2469_v4 = vld [vmem:[#allocation2 + $0x4] sm:$0xf]  ;;  %v1705_v6 = vld [vmem:[#allocation2 + $0x8] sm:$0xf0]  ;;  %v1780_v7 = vor.u32 %v2487_v59, %v1777_v60  ;;  %v1960_v15 = vor.u32 %v2534_v63, %v1959_v62 }
  0x3c   :  { %759 = vmatpush.bf16.msrb.mxu2 %v1748_v13  ;;  %v2485_v8 = vld [vmem:[#allocation2 + $0x84] sm:$0xf]  ;;  %v1769_v9 = vld [vmem:[#allocation2 + $0x88] sm:$0xf0]  ;;  %v2515_v10 = vld [vmem:[#allocation2 + $0x174] sm:$0xf]  ;;  %v2024_v19 = vor.u32 %v2550_v3, %v2023_v0  ;;  %v1708_v20 = vor.u32 %v2469_v4, %v1705_v6 }
  0x3d   :  { %773 = vmatpush.bf16.msrb.mxu3 %v1812_v17  ;;  %v1889_v12 = vld [vmem:[#allocation2 + $0x178] sm:$0xf0]  ;;  %v2531_v13 = vld [vmem:[#allocation2 + $0x1f4] sm:$0xf]  ;;  %v77_v22 = vld [vmem:[%s2884_s0 + $0x20] sm:$0xff] }
  0x3e   :  { %732 = vmatpush.bf16.msrb.mxu0 %v1992_v24  ;;  %v1953_v14 = vld [vmem:[#allocation2 + $0x1f8] sm:$0xf0]  ;;  %v2547_v16 = vld [vmem:[#allocation2 + $0x274] sm:$0xf]  ;;  %v78_v27 = vld [vmem:[%s2884_s0 + $0x28] sm:$0xff] }
  0x3f   :  { %746 = vmatpush.bf16.msrb.mxu1 %v2056_v25  ;;  %v2017_v17 = vld [vmem:[#allocation2 + $0x278] sm:$0xf0]  ;;  %v2563_v18 = vld [vmem:[#allocation2 + $0x2f4] sm:$0xf]  ;;  %v1772_v25 = vor.u32 %v2485_v8, %v1769_v9  ;;  %v1956_v29 = vor.u32 %v2531_v13, %v1953_v14  ;;  %v2513_v31 = vld [vmem:[#allocation2 + $0x164] sm:$0xf] }
  0x40   :  { %760 = vmatpush.bf16.msrb.mxu2 %v1740_v26  ;;  %v2081_v21 = vld [vmem:[#allocation2 + $0x2f8] sm:$0xf0]  ;;  %v83_v24 = vld [vmem:[%s2884_s0 + $0x50] sm:$0xff]  ;;  %v1892_v26 = vor.u32 %v2515_v10, %v1889_v12  ;;  %v1881_v32 = vld [vmem:[#allocation2 + $0x168] sm:$0xf0] }
  0x41   :  { %774 = vmatpush.bf16.msrb.mxu3 %v1804_v30  ;;  %v84_v28 = vld [vmem:[%s2884_s0 + $0x58] sm:$0xff]  ;;  %v2020_v30 = vor.u32 %v2547_v16, %v2017_v17  ;;  %v2529_v33 = vld [vmem:[#allocation2 + $0x1e4] sm:$0xf]  ;;  %v2084_v34 = vor.u32 %v2563_v18, %v2081_v21  ;;  %v2853_v35 = vpack.c.bf16 %v83_v24, %v77_v22  ;;  %v2073_v41 = vld [vmem:[#allocation2 + $0x2e8] sm:$0xf0] }
  0x42   :  { %733 = vmatpush.bf16.msrb.mxu0 %v1984_v36  ;;  %v1945_v36 = vld [vmem:[#allocation2 + $0x1e8] sm:$0xf0]  ;;  %v2855_v39 = vpack.c.bf16 %v84_v28, %v78_v27  ;;  %v2561_v40 = vld [vmem:[#allocation2 + $0x2e4] sm:$0xf]  ;;  %v2511_v45 = vld [vmem:[#allocation2 + $0x154] sm:$0xf] }
  0x43   :  { %747 = vmatpush.bf16.msrb.mxu1 %v2048_v37  ;;  %v2545_v37 = vld [vmem:[#allocation2 + $0x264] sm:$0xf]  ;;  %v1948_v43 = vor.u32 %v2529_v33, %v1945_v36  ;;  %v1873_v46 = vld [vmem:[#allocation2 + $0x158] sm:$0xf0]  ;;  %v2527_v47 = vld [vmem:[#allocation2 + $0x1d4] sm:$0xf] }
  0x44   :  { %761 = vmatpush.bf16.msrb.mxu2 %v1732_v38  ;;  %v2009_v38 = vld [vmem:[#allocation2 + $0x268] sm:$0xf0]  ;;  %v2001_v51 = vld [vmem:[#allocation2 + $0x258] sm:$0xf0]  ;;  %v2559_v52 = vld [vmem:[#allocation2 + $0x2d4] sm:$0xf] }
  0x45   :  { %775 = vmatpush.bf16.msrb.mxu3 %v1796_v42  ;;  %v1884_v42 = vor.u32 %v2513_v31, %v1881_v32  ;;  %v2012_v44 = vor.u32 %v2545_v37, %v2009_v38  ;;  %v2065_v53 = vld [vmem:[#allocation2 + $0x2d8] sm:$0xf0]  ;;  %v2509_v57 = vld [vmem:[#allocation2 + $0x144] sm:$0xf]  ;;  %v1865_v59 = vld [vmem:[#allocation2 + $0x148] sm:$0xf0] }
  0x46   :  { %734 = vmatpush.bf16.msrb.mxu0 %v1976_v48  ;;  %v2076_v48 = vor.u32 %v2561_v40, %v2073_v41  ;;  %v2525_v60 = vld [vmem:[#allocation2 + $0x1c4] sm:$0xf]  ;;  %v1929_v62 = vld [vmem:[#allocation2 + $0x1c8] sm:$0xf0]  ;;  %v2507_v3 = vld [vmem:[#allocation2 + $0x134] sm:$0xf] }
  0x47   :  { %748 = vmatpush.bf16.msrb.mxu1 %v2040_v49  ;;  %v1937_v49 = vld [vmem:[#allocation2 + $0x1d8] sm:$0xf0]  ;;  %v2541_v63 = vld [vmem:[#allocation2 + $0x244] sm:$0xf]  ;;  %v1993_v0 = vld [vmem:[#allocation2 + $0x248] sm:$0xf0] }
  0x48   :  { %762 = vmatpush.bf16.msrb.mxu2 %v1724_v50  ;;  %v2543_v50 = vld [vmem:[#allocation2 + $0x254] sm:$0xf]  ;;  %v1940_v55 = vor.u32 %v2527_v47, %v1937_v49  ;;  %v1996_v4 = vor.u32 %v2541_v63, %v1993_v0  ;;  %v1857_v6 = vld [vmem:[#allocation2 + $0x138] sm:$0xf0]  ;;  %v2505_v18 = vld [vmem:[#allocation2 + $0x124] sm:$0xf] }
  0x49   :  { %776 = vmatpush.bf16.msrb.mxu3 %v1788_v54  ;;  %v1876_v54 = vor.u32 %v2511_v45, %v1873_v46  ;;  %v2004_v56 = vor.u32 %v2543_v50, %v2001_v51  ;;  %v1921_v9 = vld [vmem:[#allocation2 + $0x1b8] sm:$0xf0]  ;;  %v2539_v10 = vld [vmem:[#allocation2 + $0x234] sm:$0xf]  ;;  %v1913_v22 = vld [vmem:[#allocation2 + $0x1a8] sm:$0xf0] }
  0x4a   :  { %735 = vmatpush.bf16.msrb.mxu0 %v1968_v61  ;;  %v2068_v61 = vor.u32 %v2559_v52, %v2065_v53  ;;  %v1985_v12 = vld [vmem:[#allocation2 + $0x238] sm:$0xf0]  ;;  %v2555_v13 = vld [vmem:[#allocation2 + $0x2b4] sm:$0xf]  ;;  %v2537_v24 = vld [vmem:[#allocation2 + $0x224] sm:$0xf] }
  0x4b   :  { %749 = vmatpush.bf16.msrb.mxu1 %v2032_v1  ;;  %v2557_v1 = vld [vmem:[#allocation2 + $0x2c4] sm:$0xf]  ;;  %v2049_v14 = vld [vmem:[#allocation2 + $0x2b8] sm:$0xf0]  ;;  %v1988_v17 = vor.u32 %v2539_v10, %v1985_v12  ;;  %v2041_v27 = vld [vmem:[#allocation2 + $0x2a8] sm:$0xf0] }
  0x4c   :  { %763 = vmatpush.bf16.msrb.mxu2 %v1716_v2  ;;  %v1868_v2 = vor.u32 %v2509_v57, %v1865_v59  ;;  %v2052_v21 = vor.u32 %v2555_v13, %v2049_v14  ;;  %v2503_v31 = vld [vmem:[#allocation2 + $0x114] sm:$0xf]  ;;  %v1841_v32 = vld [vmem:[#allocation2 + $0x118] sm:$0xf0]  ;;  %v1833_v46 = vld [vmem:[#allocation2 + $0x108] sm:$0xf0] }
  0x4d   :  { %777 = vmatpush.bf16.msrb.mxu3 %v1780_v7  ;;  %v2523_v7 = vld [vmem:[#allocation2 + $0x1b4] sm:$0xf]  ;;  %v1905_v36 = vld [vmem:[#allocation2 + $0x198] sm:$0xf0]  ;;  %v2517_v47 = vld [vmem:[#allocation2 + $0x184] sm:$0xf] }
  0x4e   :  { %736 = vmatpush.bf16.msrb.mxu0 %v1960_v15  ;;  %v1860_v15 = vor.u32 %v2507_v3, %v1857_v6  ;;  %v1924_v16 = vor.u32 %v2523_v7, %v1921_v9  ;;  %v2519_v33 = vld [vmem:[#allocation2 + $0x194] sm:$0xf]  ;;  %v1969_v38 = vld [vmem:[#allocation2 + $0x218] sm:$0xf0]  ;;  %v2533_v50 = vld [vmem:[#allocation2 + $0x204] sm:$0xf] }
  0x4f   :  { %750 = vmatpush.bf16.msrb.mxu1 %v2024_v19  ;;  %v1849_v19 = vld [vmem:[#allocation2 + $0x128] sm:$0xf0]  ;;  %v2535_v37 = vld [vmem:[#allocation2 + $0x214] sm:$0xf]  ;;  %v2033_v41 = vld [vmem:[#allocation2 + $0x298] sm:$0xf0] }
  0x50   :  { %764 = vmatpush.bf16.msrb.mxu2 %v1708_v20  ;;  %v2521_v20 = vld [vmem:[#allocation2 + $0x1a4] sm:$0xf]  ;;  %v1852_v28 = vor.u32 %v2505_v18, %v1849_v19  ;;  %v2551_v40 = vld [vmem:[#allocation2 + $0x294] sm:$0xf]  ;;  %v1972_v45 = vor.u32 %v2535_v37, %v1969_v38  ;;  %v1961_v51 = vld [vmem:[#allocation2 + $0x208] sm:$0xf0] }
  0x51   :  { %778 = vmatpush.bf16.msrb.mxu3 %v1772_v25  ;;  %737 = vmatmul.bf16.vlgmr.msrb.gmra.mxu0 %v2853_v35  ;;  %v1977_v25 = vld [vmem:[#allocation2 + $0x228] sm:$0xf0]  ;;  %v2036_v49 = vor.u32 %v2551_v40, %v2033_v41  ;;  %v2549_v52 = vld [vmem:[#allocation2 + $0x284] sm:$0xf]  ;;  %v2201_v59 = vld [vmem:[#allocation4 + $0xf0] sm:$0xf0] }
  0x52   :  { %785 = vmatpush.bf16.msra.mxu0 %v1892_v26  ;;  %751 = vmatmul.bf16.vlgmr.msrb.gmra.mxu1 %v2855_v39  ;;  %v2553_v26 = vld [vmem:[#allocation2 + $0x2a4] sm:$0xf]  ;;  %v2025_v53 = vld [vmem:[#allocation2 + $0x288] sm:$0xf0]  ;;  %v2185_v3 = vld [vmem:[#allocation4 + $0xd0] sm:$0xf0] }
  0x53   :  { %799 = vmatpush.bf16.msra.mxu1 %v1956_v29  ;;  %765 = vmatmul.bf16.vlgmr.msrb.gmra.mxu2 %v2811_v58  ;;  %v2057_v58 = vld [vmem:[#allocation2 + $0x2c8] sm:$0xf0]  ;;  %v1916_v29 = vor.u32 %v2521_v20, %v1913_v22  ;;  %v2593_v57 = vld [vmem:[#allocation4 + $0xe4] sm:$0xf]  ;;  %v2167_v6 = vld [vmem:[#allocation4 + $0xa0] sm:$0xf] }
  0x54   :  { %813 = vmatpush.bf16.msra.mxu2 %v2020_v30  ;;  %779 = vmatmul.bf16.vlgmr.msrb.gmra.mxu3 %v2820_v5  ;;  %v1932_v5 = vor.u32 %v2525_v60, %v1929_v62  ;;  %v2060_v8 = vor.u32 %v2557_v1, %v2057_v58  ;;  %v1980_v30 = vor.u32 %v2537_v24, %v1977_v25  ;;  %v2183_v1 = vld [vmem:[#allocation4 + $0xc0] sm:$0xf]  ;;  %v2591_v58 = vld [vmem:[#allocation4 + $0xcc] sm:$0xf0]  ;;  %v2169_v9 = vld [vmem:[#allocation4 + $0xb0] sm:$0xf0] }
  0x55   :  { %827 = vmatpush.bf16.msra.mxu3 %v2084_v34  ;;  %v2044_v34 = vor.u32 %v2553_v26, %v2041_v27  ;;  %v2028_v62 = vor.u32 %v2549_v52, %v2025_v53  ;;  %v2204_v0 = vor.u32 %v2593_v57, %v2201_v59  ;;  %v2587_v7 = vld [vmem:[#allocation4 + $0xac] sm:$0xf0]  ;;  %v2151_v13 = vld [vmem:[#allocation4 + $0x80] sm:$0xf]  ;;  %v2581_v14 = vld [vmem:[#allocation4 + $0x84] sm:$0xf] }
  0x56   :  { %786 = vmatpush.bf16.msra.mxu0 %v1884_v42  ;;  %v1844_v42 = vor.u32 %v2503_v31, %v1841_v32  ;;  %v2168_v10 = vor.u32 %v2587_v7, %v2167_v6  ;;  %v2579_v18 = vld [vmem:[#allocation4 + $0x6c] sm:$0xf0]  ;;  %v2577_v19 = vld [vmem:[#allocation4 + $0x64] sm:$0xf]  ;;  %v2121_v26 = vld [vmem:[#allocation4 + $0x50] sm:$0xf0] }
  0x57   :  { %800 = vmatpush.bf16.msra.mxu1 %v1948_v43  ;;  %v2501_v43 = vld [vmem:[#allocation2 + $0x104] sm:$0xf]  ;;  %v2575_v22 = vld [vmem:[#allocation4 + $0x4c] sm:$0xf0]  ;;  %v2105_v32 = vld [vmem:[#allocation4 + $0x30] sm:$0xf0] }
  0x58   :  { %814 = vmatpush.bf16.msra.mxu2 %v2012_v44  ;;  %v1908_v44 = vor.u32 %v2519_v33, %v1905_v36  ;;  %v2573_v24 = vld [vmem:[#allocation4 + $0x44] sm:$0xf]  ;;  %v2567_v36 = vld [vmem:[#allocation4 + $0xc] sm:$0xf0]  ;;  %v2089_v40 = vld [vmem:[#allocation4 + $0x10] sm:$0xf0] }
  0x59   :  { %828 = vmatpush.bf16.msra.mxu3 %v2076_v48  ;;  %v1897_v48 = vld [vmem:[#allocation2 + $0x188] sm:$0xf0]  ;;  %v2124_v27 = vor.u32 %v2573_v24, %v2121_v26  ;;  %v2565_v37 = vld [vmem:[#allocation4 + $0x4] sm:$0xf]  ;;  %v2207_v41 = vld [vmem:[#allocation4 + $0xe8] sm:$0xf] }
  0x5a   :  { %787 = vmatpush.bf16.msra.mxu0 %v1876_v54  ;;  %v2199_v54 = vld [vmem:[#allocation4 + $0xe0] sm:$0xf]  ;;  %v1900_v60 = vor.u32 %v2517_v47, %v1897_v48  ;;  %v2191_v48 = vld [vmem:[#allocation4 + $0xc8] sm:$0xf]  ;;  %v2193_v52 = vld [vmem:[#allocation4 + $0xd8] sm:$0xf0] }
  0x5b   :  { %801 = vmatpush.bf16.msra.mxu1 %v1940_v55  ;;  %v2595_v55 = vld [vmem:[#allocation4 + $0xec] sm:$0xf0]  ;;  %v2868_v57 = vld [vmem:[%s2886_s2] sm:$0x3]  ;;  %v2621_v7 = vld [vmem:[#allocation4 + $0x1c4] sm:$0xf] }
  0x5c   :  { %815 = vmatpush.bf16.msra.mxu2 %v2004_v56  ;;  %v1836_v56 = vor.u32 %v2501_v43, %v1833_v46  ;;  %v2200_v63 = vor.u32 %v2595_v55, %v2199_v54  ;;  %v2092_v43 = vor.u32 %v2565_v37, %v2089_v40  ;;  %v2209_v46 = vld [vmem:[#allocation4 + $0xf8] sm:$0xf0]  ;;  %v2327_v54 = vld [vmem:[#allocation4 + $0x1e0] sm:$0xf]  ;;  %v2627_v55 = vld [vmem:[#allocation4 + $0x1ec] sm:$0xf0] }
  0x5d   :  { %829 = vmatpush.bf16.msra.mxu3 %v2068_v61  ;;  %v1964_v61 = vor.u32 %v2533_v50, %v1961_v51  ;;  %v2590_v50 = vld [vmem:[#allocation4 + $0xcc] sm:$0xf]  ;;  %v2328_v59 = vor.u32 %v2627_v55, %v2327_v54  ;;  %v2623_v6 = vld [vmem:[#allocation4 + $0x1cc] sm:$0xf0]  ;;  %v2580_v24 = vld [vmem:[#allocation4 + $0x74] sm:$0xf0] }
  0x5e   :  { %788 = vmatpush.bf16.msra.mxu0 %v1868_v2  ;;  %v2589_v2 = vld [vmem:[#allocation4 + $0xc4] sm:$0xf]  ;;  %v2196_v53 = vor.u32 %v2590_v50, %v2193_v52  ;;  %v2576_v40 = vld [vmem:[#allocation4 + $0x54] sm:$0xf0]  ;;  %v2265_v52 = vld [vmem:[#allocation4 + $0x170] sm:$0xf0] }
  0x5f   :  { %802 = vmatpush.bf16.msra.mxu1 %v1932_v5  ;;  %v2184_v5 = vor.u32 %v2591_v58, %v2183_v1  ;;  %v2572_v54 = vld [vmem:[#allocation4 + $0x34] sm:$0xf0] }
  0x60   :  { %816 = vmatpush.bf16.msra.mxu2 %v1996_v4  ;;  %v2188_v4 = vor.u32 %v2589_v2, %v2185_v3  ;;  %v2177_v2 = vld [vmem:[#allocation4 + $0xb8] sm:$0xf0] }
  0x61   :  { %830 = vmatpush.bf16.msra.mxu3 %v2060_v8  ;;  %v2585_v8 = vld [vmem:[#allocation4 + $0xa4] sm:$0xf] }
  0x62   :  { %789 = vmatpush.bf16.msra.mxu0 %v1860_v15  ;;  %v2172_v12 = vor.u32 %v2585_v8, %v2169_v9  ;;  %v189_v8 = vperm.slane %v2868_v57, 0 }
  0x63   :  { %803 = vmatpush.bf16.msra.mxu1 %v1924_v16  ;;  %v2153_v16 = vld [vmem:[#allocation4 + $0x90] sm:$0xf0] }
  0x64   :  { %817 = vmatpush.bf16.msra.mxu2 %v1988_v17  ;;  %v2135_v17 = vld [vmem:[#allocation4 + $0x60] sm:$0xf] }
  0x65   :  { %831 = vmatpush.bf16.msra.mxu3 %v2052_v21  ;;  %v2136_v20 = vor.u32 %v2579_v18, %v2135_v17  ;;  %v2119_v21 = vld [vmem:[#allocation4 + $0x40] sm:$0xf] }
  0x66   :  { %790 = vmatpush.bf16.msra.mxu0 %v1852_v28  ;;  %v2120_v25 = vor.u32 %v2575_v22, %v2119_v21  ;;  %v2103_v28 = vld [vmem:[#allocation4 + $0x20] sm:$0xf]  ;;  %v2143_v22 = vld [vmem:[#allocation4 + $0x68] sm:$0xf] }
  0x67   :  { %804 = vmatpush.bf16.msra.mxu1 %v1916_v29  ;;  %v2571_v29 = vld [vmem:[#allocation4 + $0x2c] sm:$0xf0]  ;;  %v2295_v18 = vld [vmem:[#allocation4 + $0x1a0] sm:$0xf] }
  0x68   :  { %818 = vmatpush.bf16.msra.mxu2 %v1980_v30  ;;  %v2569_v30 = vld [vmem:[#allocation4 + $0x24] sm:$0xf]  ;;  %v2104_v31 = vor.u32 %v2571_v29, %v2103_v28  ;;  %v2145_v28 = vld [vmem:[#allocation4 + $0x78] sm:$0xf0]  ;;  %v2279_v29 = vld [vmem:[#allocation4 + $0x180] sm:$0xf] }
  0x69   :  { %832 = vmatpush.bf16.msra.mxu3 %v2044_v34  ;;  %v2108_v33 = vor.u32 %v2569_v30, %v2105_v32  ;;  %v2087_v34 = vld [vmem:[#allocation4] sm:$0xf]  ;;  %v2615_v30 = vld [vmem:[#allocation4 + $0x18c] sm:$0xf0] }
  0x6a   :  { %791 = vmatpush.bf16.msra.mxu0 %v1844_v42  ;;  %v2088_v38 = vor.u32 %v2567_v36, %v2087_v34  ;;  %v2596_v42 = vld [vmem:[#allocation4 + $0xf4] sm:$0xf0]  ;;  %v2280_v32 = vor.u32 %v2615_v30, %v2279_v29  ;;  %v2281_v34 = vld [vmem:[#allocation4 + $0x190] sm:$0xf0]  ;;  %v2127_v36 = vld [vmem:[#allocation4 + $0x48] sm:$0xf] }
  0x6b   :  { %805 = vmatpush.bf16.msra.mxu1 %v1908_v44  ;;  %v2208_v44 = vor.u32 %v2596_v42, %v2207_v41  ;;  %v2574_v41 = vld [vmem:[#allocation4 + $0x4c] sm:$0xf]  ;;  %v2129_v42 = vld [vmem:[#allocation4 + $0x58] sm:$0xf0]  ;;  %v2335_v29 = vld [vmem:[#allocation4 + $0x1e8] sm:$0xf] }
  0x6c   :  { %819 = vmatpush.bf16.msra.mxu2 %v1972_v45  ;;  %v2594_v45 = vld [vmem:[#allocation4 + $0xec] sm:$0xf] }
  0x6d   :  { %833 = vmatpush.bf16.msra.mxu3 %v2036_v49  ;;  %v2212_v47 = vor.u32 %v2594_v45, %v2209_v46  ;;  %v2592_v49 = vld [vmem:[#allocation4 + $0xd4] sm:$0xf0]  ;;  %v2128_v45 = vor.u32 %v2576_v40, %v2127_v36  ;;  %v2132_v46 = vor.u32 %v2574_v41, %v2129_v42  ;;  %v2319_v42 = vld [vmem:[#allocation4 + $0x1c8] sm:$0xf] }
  0x6e   :  { %792 = vmatpush.bf16.msra.mxu0 %v1836_v56  ;;  %v2192_v51 = vor.u32 %v2592_v49, %v2191_v48  ;;  %v2625_v56 = vld [vmem:[#allocation4 + $0x1e4] sm:$0xf]  ;;  %v2611_v48 = vld [vmem:[#allocation4 + $0x16c] sm:$0xf0] }
  0x6f   :  { %806 = vmatpush.bf16.msra.mxu1 %v1900_v60  ;;  %v2329_v60 = vld [vmem:[#allocation4 + $0x1f0] sm:$0xf0]  ;;  %v2609_v49 = vld [vmem:[#allocation4 + $0x164] sm:$0xf] }
  0x70   :  { %820 = vmatpush.bf16.msra.mxu2 %v1964_v61  ;;  %v2332_v61 = vor.u32 %v2625_v56, %v2329_v60  ;;  %v2268_v56 = vor.u32 %v2609_v49, %v2265_v52  ;;  %v2113_v60 = vld [vmem:[#allocation4 + $0x38] sm:$0xf0]  ;;  %v2620_v52 = vld [vmem:[#allocation4 + $0x1b4] sm:$0xf0] }
  0x71   :  { %834 = vmatpush.bf16.msra.mxu3 %v2028_v62  ;;  %793 = vmatmul.bf16.vlgmr.msra.gmra.mxu0 %v2828_v11  ;;  %v2583_v11 = vld [vmem:[#allocation4 + $0x8c] sm:$0xf0]  ;;  %v2175_v62 = vld [vmem:[#allocation4 + $0xa8] sm:$0xf] }
  0x72   :  { %1245 = vmatpush.bf16.msrb.mxu0 %v2200_v63  ;;  %807 = vmatmul.bf16.vlgmr.msra.gmra.mxu1 %v2838_v23  ;;  %v2152_v15 = vor.u32 %v2583_v11, %v2151_v13  ;;  %v2156_v23 = vor.u32 %v2581_v14, %v2153_v16  ;;  %v2588_v63 = vld [vmem:[#allocation4 + $0xb4] sm:$0xf0]  ;;  %v2159_v13 = vld [vmem:[#allocation4 + $0x88] sm:$0xf]  ;;  %v2582_v14 = vld [vmem:[#allocation4 + $0x8c] sm:$0xf] }
  0x73   :  { %821 = vmatmul.bf16.vlgmr.msra.gmra.mxu2 %v2853_v35  ;;  %v2137_v35 = vld [vmem:[#allocation4 + $0x70] sm:$0xf0]  ;;  %1259 = vmatpush.bf16.msrb.mxu1 %v2328_v59  ;;  %v2176_v58 = vor.u32 %v2588_v63, %v2175_v62  ;;  %v2584_v11 = vld [vmem:[#allocation4 + $0x94] sm:$0xf0]  ;;  %v2161_v16 = vld [vmem:[#allocation4 + $0x98] sm:$0xf0] }
  0x74   :  { %1273 = vmatpush.bf16.msrb.mxu2 %v2204_v0  ;;  %835 = vmatmul.bf16.vlgmr.msra.gmra.mxu3 %v2855_v39  ;;  %v2140_v39 = vor.u32 %v2577_v19, %v2137_v35  ;;  %v2586_v0 = vld [vmem:[#allocation4 + $0xac] sm:$0xf]  ;;  %v2164_v17 = vor.u32 %v2582_v14, %v2161_v16  ;;  %v2617_v35 = vld [vmem:[#allocation4 + $0x1a4] sm:$0xf]  ;;  %v2231_v14 = vld [vmem:[#allocation4 + $0x120] sm:$0xf] }
  0x75   :  { %1287 = vmatpush.bf16.msrb.mxu3 %v2332_v61  ;;  %v2570_v59 = vld [vmem:[#allocation4 + $0x2c] sm:$0xf] }
  0x76   :  { %1246 = vmatpush.bf16.msrb.mxu0 %v2184_v5  ;;  %v2180_v5 = vor.u32 %v2586_v0, %v2177_v2  ;;  %v2116_v63 = vor.u32 %v2570_v59, %v2113_v60  ;;  %v2605_v2 = vld [vmem:[#allocation4 + $0x144] sm:$0xf]  ;;  %v2305_v59 = vld [vmem:[#allocation4 + $0x1b8] sm:$0xf0] }
  0x78   :  { %1274 = vmatpush.bf16.msrb.mxu2 %v2188_v4  ;;  %v2311_v4 = vld [vmem:[#allocation4 + $0x1c0] sm:$0xf] }
  0x79   :  { %v2312_v9 = vor.u32 %v2623_v6, %v2311_v4  ;;  %v2249_v4 = vld [vmem:[#allocation4 + $0x150] sm:$0xf0] }
  0x7a   :  { %1247 = vmatpush.bf16.msrb.mxu0 %v2168_v10  ;;  %v2313_v10 = vld [vmem:[#allocation4 + $0x1d0] sm:$0xf0] }
  0x7b   :  { %1260 = vmatpush.bf16.msrb.mxu1 %v2312_v9  ;;  %v2568_v9 = vld [vmem:[#allocation4 + $0x14] sm:$0xf0] }
  0x7c   :  { %1275 = vmatpush.bf16.msrb.mxu2 %v2172_v12  ;;  %v2316_v12 = vor.u32 %v2621_v7, %v2313_v10  ;;  %v2252_v7 = vor.u32 %v2605_v2, %v2249_v4  ;;  %v2566_v10 = vld [vmem:[#allocation4 + $0xc] sm:$0xf]  ;;  %v190_v4 = vperm.slane %v2868_v57, 1 }
  0x7d   :  { %v2602_v57 = vld [vmem:[#allocation4 + $0x12c] sm:$0xf] }
  0x7e   :  { %1248 = vmatpush.bf16.msrb.mxu0 %v2152_v15  ;;  %v2160_v15 = vor.u32 %v2584_v11, %v2159_v13  ;;  %1288 = vmatpush.bf16.msrb.mxu3 %v2316_v12  ;;  %v2097_v11 = vld [vmem:[#allocation4 + $0x18] sm:$0xf0] }
  0x80   :  { %1276 = vmatpush.bf16.msrb.mxu2 %v2156_v23  ;;  %v2619_v23 = vld [vmem:[#allocation4 + $0x1ac] sm:$0xf0] }
  0x81   :  { %v2296_v19 = vor.u32 %v2619_v23, %v2295_v18  ;;  %v2100_v18 = vor.u32 %v2566_v10, %v2097_v11  ;;  %v2273_v10 = vld [vmem:[#allocation4 + $0x178] sm:$0xf0] }
  0x82   :  { %1249 = vmatpush.bf16.msrb.mxu0 %v2136_v20  ;;  %v2297_v20 = vld [vmem:[#allocation4 + $0x1b0] sm:$0xf0] }
  0x83   :  { %v2300_v21 = vor.u32 %v2617_v35, %v2297_v20  ;;  %1261 = vmatpush.bf16.msrb.mxu1 %v2296_v19  ;;  %v2601_v19 = vld [vmem:[#allocation4 + $0x124] sm:$0xf]  ;;  %v2233_v35 = vld [vmem:[#allocation4 + $0x130] sm:$0xf0] }
  0x84   :  { %1277 = vmatpush.bf16.msrb.mxu2 %v2140_v39 }
  0x85   :  { %1289 = vmatpush.bf16.msrb.mxu3 %v2300_v21 }
  0x86   :  { %1250 = vmatpush.bf16.msrb.mxu0 %v2120_v25  ;;  %v2578_v25 = vld [vmem:[#allocation4 + $0x6c] sm:$0xf] }
  0x87   :  { %1262 = vmatpush.bf16.msrb.mxu1 %v2280_v32  ;;  %v2628_v32 = vld [vmem:[#allocation4 + $0x1f4] sm:$0xf0] }
  0x88   :  { %1278 = vmatpush.bf16.msrb.mxu2 %v2124_v27  ;;  %v2144_v27 = vor.u32 %v2580_v24, %v2143_v22  ;;  %v2215_v24 = vld [vmem:[#allocation4 + $0x100] sm:$0xf] }
  0x8a   :  { %1251 = vmatpush.bf16.msrb.mxu0 %v2104_v31  ;;  %v2148_v31 = vor.u32 %v2578_v25, %v2145_v28  ;;  %v2599_v25 = vld [vmem:[#allocation4 + $0x10c] sm:$0xf0]  ;;  %v2217_v28 = vld [vmem:[#allocation4 + $0x110] sm:$0xf0] }
  0x8c   :  { %1279 = vmatpush.bf16.msrb.mxu2 %v2108_v33  ;;  %v2613_v33 = vld [vmem:[#allocation4 + $0x184] sm:$0xf] }
  0x8e   :  { %1252 = vmatpush.bf16.msrb.mxu0 %v2088_v38  ;;  %v2284_v38 = vor.u32 %v2613_v33, %v2281_v34  ;;  %v2626_v33 = vld [vmem:[#allocation4 + $0x1ec] sm:$0xf]  ;;  %v2337_v34 = vld [vmem:[#allocation4 + $0x1f8] sm:$0xf0] }
  0x90   :  { %1280 = vmatpush.bf16.msrb.mxu2 %v2092_v43  ;;  %1290 = vmatpush.bf16.msrb.mxu3 %v2284_v38  ;;  %v2340_v38 = vor.u32 %v2626_v33, %v2337_v34 }
  0x92   :  { %1301 = vmatpush.bf16.msra.mxu0 %v2208_v44 }
  0x94   :  { %1329 = vmatpush.bf16.msra.mxu2 %v2212_v47  ;;  %v2263_v47 = vld [vmem:[#allocation4 + $0x160] sm:$0xf]  ;;  %1291 = vmatpush.bf16.msrb.mxu3 %v2268_v56 }
  0x96   :  { %1302 = vmatpush.bf16.msra.mxu0 %v2192_v51  ;;  %v2264_v51 = vor.u32 %v2611_v48, %v2263_v47  ;;  %v2321_v48 = vld [vmem:[#allocation4 + $0x1d8] sm:$0xf0] }
  0x98   :  { %1330 = vmatpush.bf16.msra.mxu2 %v2196_v53  ;;  %v2111_v53 = vld [vmem:[#allocation4 + $0x28] sm:$0xf]  ;;  %1263 = vmatpush.bf16.msrb.mxu1 %v2264_v51 }
  0x99   :  { %v2112_v61 = vor.u32 %v2572_v54, %v2111_v53  ;;  %1292 = vmatpush.bf16.msrb.mxu3 %v2252_v7  ;;  %v2303_v51 = vld [vmem:[#allocation4 + $0x1a8] sm:$0xf]  ;;  %v2618_v53 = vld [vmem:[#allocation4 + $0x1ac] sm:$0xf]  ;;  %v2612_v7 = vld [vmem:[#allocation4 + $0x174] sm:$0xf0] }
  0x9a   :  { %1303 = vmatpush.bf16.msra.mxu0 %v2176_v58  ;;  %v2607_v58 = vld [vmem:[#allocation4 + $0x14c] sm:$0xf0]  ;;  %v2304_v56 = vor.u32 %v2620_v52, %v2303_v51  ;;  %v2308_v60 = vor.u32 %v2618_v53, %v2305_v59 }
  0x9b   :  { %v2635_v59 = vld [vmem:[#allocation6 + $0x30] sm:$0xff] }
  0x9c   :  { %1331 = vmatpush.bf16.msra.mxu2 %v2180_v5 }
  0x9e   :  { %1304 = vmatpush.bf16.msra.mxu0 %v2160_v15  ;;  %v2603_v15 = vld [vmem:[#allocation4 + $0x12c] sm:$0xf0] }
  0x9f   :  { %v2232_v23 = vor.u32 %v2603_v15, %v2231_v14  ;;  %v2606_v14 = vld [vmem:[#allocation4 + $0x14c] sm:$0xf]  ;;  %v2257_v15 = vld [vmem:[#allocation4 + $0x158] sm:$0xf0] }
  0xa0   :  { %1332 = vmatpush.bf16.msra.mxu2 %v2164_v17 }
  0xa2   :  { %1305 = vmatpush.bf16.msra.mxu0 %v2144_v27  ;;  %v2597_v27 = vld [vmem:[#allocation4 + $0x104] sm:$0xf] }
  0xa4   :  { %1333 = vmatpush.bf16.msra.mxu2 %v2148_v31  ;;  %v2220_v31 = vor.u32 %v2597_v27, %v2217_v28  ;;  %v2600_v27 = vld [vmem:[#allocation4 + $0x114] sm:$0xf0]  ;;  %v2598_v28 = vld [vmem:[#allocation4 + $0x10c] sm:$0xf] }
  0xa6   :  { %1306 = vmatpush.bf16.msra.mxu0 %v2128_v45 }
  0xa8   :  { %1334 = vmatpush.bf16.msra.mxu2 %v2132_v46 }
  0xaa   :  { %1307 = vmatpush.bf16.msra.mxu0 %v2112_v61 }
  0xac   :  { %1335 = vmatpush.bf16.msra.mxu2 %v2116_v63  ;;  %v2287_v63 = vld [vmem:[#allocation4 + $0x188] sm:$0xf] }
  0xae   :  { %v682_v1 = vpop.f32.mrf.mxu0 }
  0xaf   :  { %v696_v3 = vpop.f32.mrf.mxu1  ;;  %v683_v39 = vadd.f32 %v682_v1, %v189_v8  ;;  %v2247_v1 = vld [vmem:[#allocation4 + $0x140] sm:$0xf] }
  0xb0   :  { %v2248_v5 = vor.u32 %v2607_v58, %v2247_v1  ;;  %1336 = vmatpush.bf16.msra.mxu2 %v2100_v18  ;;  %v2614_v1 = vld [vmem:[#allocation4 + $0x18c] sm:$0xf]  ;;  %v2239_v18 = vld [vmem:[#allocation4 + $0x128] sm:$0xf] }
  0xb1   :  { %v697_v43 = vadd.f32 %v696_v3, %v683_v39  ;;  %v2236_v39 = vor.u32 %v2601_v19, %v2233_v35  ;;  %v2604_v19 = vld [vmem:[#allocation4 + $0x134] sm:$0xf0]  ;;  %v2241_v35 = vld [vmem:[#allocation4 + $0x138] sm:$0xf0] }
  0xb2   :  { %1264 = vmatpush.bf16.msrb.mxu1 %v2248_v5 }
  0xb3   :  { %1293 = vmatpush.bf16.msrb.mxu3 %v2236_v39 }
  0xb6   :  { %v710_v26 = vpop.f32.mrf.mxu2  ;;  %v684_v37 = vpop.f32.mrf.mxu0  ;;  %1265 = vmatpush.bf16.msrb.mxu1 %v2232_v23 }
  0xb7   :  { %v698_v44 = vpop.f32.mrf.mxu1  ;;  %v724_v50 = vpop.f32.mrf.mxu3  ;;  %v685_v55 = vadd.f32 %v684_v37, %v189_v8  ;;  %v711_v62 = vadd.f32 %v710_v26, %v697_v43  ;;  %v2095_v8 = vld [vmem:[#allocation4 + $0x8] sm:$0xf]  ;;  %v2216_v26 = vor.u32 %v2599_v25, %v2215_v24  ;;  %v2336_v37 = vor.u32 %v2628_v32, %v2335_v29  ;;  %1294 = vmatpush.bf16.msrb.mxu3 %v2220_v31  ;;  %v2624_v43 = vld [vmem:[#allocation4 + $0x1d4] sm:$0xf0]  ;;  %v2225_v29 = vld [vmem:[#allocation4 + $0x118] sm:$0xf0] }
  0xb8   :  { %v2096_v13 = vor.u32 %v2568_v9, %v2095_v8  ;;  %v2320_v47 = vor.u32 %v2624_v43, %v2319_v42  ;;  %v2610_v8 = vld [vmem:[#allocation4 + $0x16c] sm:$0xf]  ;;  %v2244_v24 = vor.u32 %v2602_v57, %v2241_v35  ;;  %v2223_v25 = vld [vmem:[#allocation4 + $0x108] sm:$0xf]  ;;  %v2228_v34 = vor.u32 %v2598_v28, %v2225_v29  ;;  %v2655_v35 = vld [vmem:[#allocation6 + $0xd0] sm:$0xff] }
  0xb9   :  { %v699_v0 = vadd.f32 %v698_v44, %v685_v55  ;;  %v725_v6 = vadd.f32 %v724_v50, %v711_v62  ;;  %v2622_v44 = vld [vmem:[#allocation4 + $0x1cc] sm:$0xf]  ;;  %v2276_v11 = vor.u32 %v2610_v8, %v2273_v10  ;;  %v2224_v33 = vor.u32 %v2600_v27, %v2223_v25  ;;  %v2659_v10 = vld [vmem:[#allocation6 + $0xf0] sm:$0xff]  ;;  %v2653_v28 = vld [vmem:[#allocation6 + $0xc0] sm:$0xff] }
  0xba   :  { %1308 = vmatpush.bf16.msra.mxu0 %v2096_v13  ;;  %1266 = vmatpush.bf16.msrb.mxu1 %v2216_v26  ;;  %v2324_v49 = vor.u32 %v2622_v44, %v2321_v48  ;;  %v2608_v13 = vld [vmem:[#allocation4 + $0x154] sm:$0xf0]  ;;  %v2650_v8 = vld [vmem:[#allocation6 + $0xa8] sm:$0xff] }
  0xbb   :  { %1343 = vmatpush.bf16.msra.mxu3 %v2340_v38  ;;  %v2646_v57 = vld [vmem:[#allocation6 + $0x88] sm:$0xff] }
  0xbe   :  { %v712_v3 = vpop.f32.mrf.mxu2  ;;  %1315 = vmatpush.bf16.msra.mxu1 %v2336_v37 }
  0xbf   :  { %v713_v17 = vadd.f32 %v712_v3, %v699_v0  ;;  %v726_v20 = vpop.f32.mrf.mxu3  ;;  %1344 = vmatpush.bf16.msra.mxu3 %v2324_v49  ;;  %v2616_v0 = vld [vmem:[#allocation4 + $0x194] sm:$0xf0]  ;;  %v2289_v3 = vld [vmem:[#allocation4 + $0x198] sm:$0xf0] }
  0xc0   :  { %v2288_v2 = vor.u32 %v2616_v0, %v2287_v63  ;;  %v2292_v5 = vor.u32 %v2614_v1, %v2289_v3  ;;  %v2633_v63 = vld [vmem:[#allocation6 + $0x20] sm:$0xff]  ;;  %v2642_v0 = vld [vmem:[#allocation6 + $0x68] sm:$0xff]  ;;  %v2632_v1 = vld [vmem:[#allocation6 + $0x18] sm:$0xff] }
  0xc1   :  { %v727_v22 = vadd.f32 %v726_v20, %v713_v17  ;;  %v2260_v17 = vor.u32 %v2606_v14, %v2257_v15  ;;  %v2631_v3 = vld [vmem:[#allocation6 + $0x10] sm:$0xff]  ;;  %v2658_v14 = vld [vmem:[#allocation6 + $0xe8] sm:$0xff]  ;;  %v2648_v15 = vld [vmem:[#allocation6 + $0x98] sm:$0xff] }
  0xc2   :  { %1316 = vmatpush.bf16.msra.mxu1 %v2320_v47 }
  0xc3   :  { %1345 = vmatpush.bf16.msra.mxu3 %v2308_v60  ;;  %v2644_v60 = vld [vmem:[#allocation6 + $0x78] sm:$0xff] }
  0xc6   :  { %1317 = vmatpush.bf16.msra.mxu1 %v2304_v56  ;;  %v2636_v56 = vld [vmem:[#allocation6 + $0x38] sm:$0xff] }
  0xc7   :  { %1346 = vmatpush.bf16.msra.mxu3 %v2292_v5  ;;  %v2651_v5 = vld [vmem:[#allocation6 + $0xb0] sm:$0xff] }
  0xca   :  { %1318 = vmatpush.bf16.msra.mxu1 %v2288_v2  ;;  %v2641_v2 = vld [vmem:[#allocation6 + $0x60] sm:$0xff] }
  0xcb   :  { %1347 = vmatpush.bf16.msra.mxu3 %v2276_v11  ;;  %v2638_v11 = vld [vmem:[#allocation6 + $0x48] sm:$0xff] }
  0xce   :  { %v738_v12 = vpop.f32.mrf.mxu0 }
  0xcf   :  { %v752_v16 = vpop.f32.mrf.mxu1  ;;  %v739_v21 = vadd.f32 %v738_v12, %v725_v6  ;;  %v2271_v6 = vld [vmem:[#allocation4 + $0x168] sm:$0xf]  ;;  %1348 = vmatpush.bf16.msra.mxu3 %v2260_v17  ;;  %v2657_v17 = vld [vmem:[#allocation6 + $0xe0] sm:$0xff] }
  0xd0   :  { %v2272_v9 = vor.u32 %v2612_v7, %v2271_v6  ;;  %v2255_v12 = vld [vmem:[#allocation4 + $0x148] sm:$0xf]  ;;  %v2660_v6 = vld [vmem:[#allocation6 + $0xf8] sm:$0xff] }
  0xd1   :  { %v753_v30 = vadd.f32 %v752_v16, %v739_v21  ;;  %v2256_v16 = vor.u32 %v2608_v13, %v2255_v12  ;;  %v2630_v7 = vld [vmem:[#allocation6 + $0x8] sm:$0xff]  ;;  %v2629_v12 = vld [vmem:[#allocation6] sm:$0xff] }
  0xd2   :  { %1319 = vmatpush.bf16.msra.mxu1 %v2272_v9  ;;  %v2639_v9 = vld [vmem:[#allocation6 + $0x50] sm:$0xff]  ;;  %v2649_v13 = vld [vmem:[#allocation6 + $0xa0] sm:$0xff] }
  0xd3   :  { %v841_v45 = vmul.f32 0.2, %v753_v30  ;;  %1349 = vmatpush.bf16.msra.mxu3 %v2244_v24  ;;  %v2654_v24 = vld [vmem:[#allocation6 + $0xc8] sm:$0xff] }
  0xd5   :  { %v845_v54 = vmax.f32 %v753_v30, %v841_v45 }
  0xd6   :  { %v740_v36 = vpop.f32.mrf.mxu0  ;;  %v766_v62 = vpop.f32.mrf.mxu2  ;;  %1320 = vmatpush.bf16.msra.mxu1 %v2256_v16  ;;  %v2637_v16 = vld [vmem:[#allocation6 + $0x40] sm:$0xff] }
  0xd7   :  { %v741_v40 = vadd.f32 %v740_v36, %v727_v22  ;;  %v754_v41 = vpop.f32.mrf.mxu1  ;;  %v780_v58 = vpop.f32.mrf.mxu3  ;;  %v767_v23 = vadd.f32 %v766_v62, %v190_v4  ;;  %v2240_v22 = vor.u32 %v2604_v19, %v2239_v18  ;;  %1350 = vmatpush.bf16.msra.mxu3 %v2228_v34  ;;  %v2643_v62 = vld [vmem:[#allocation6 + $0x70] sm:$0xff]  ;;  %v2656_v19 = vld [vmem:[#allocation6 + $0xd8] sm:$0xff] }
  0xd8   :  { %v2647_v18 = vld [vmem:[#allocation6 + $0x90] sm:$0xff] }
  0xd9   :  { %v755_v46 = vadd.f32 %v754_v41, %v741_v40  ;;  %v781_v26 = vadd.f32 %v780_v58, %v767_v23  ;;  %v2652_v58 = vld [vmem:[#allocation6 + $0xb8] sm:$0xff] }
  0xda   :  { %1321 = vmatpush.bf16.msra.mxu1 %v2240_v22 }
  0xdb   :  { %v843_v50 = vmul.f32 0.2, %v755_v46 }
  0xdd   :  { %v847_v55 = vmax.f32 %v755_v46, %v843_v50 }
  0xde   :  { %v768_v20 = vpop.f32.mrf.mxu2  ;;  %1322 = vmatpush.bf16.msra.mxu1 %v2224_v33 }
  0xdf   :  { %v849_v61 = vpack.c.bf16 %v847_v55, %v845_v54  ;;  %v782_v39 = vpop.f32.mrf.mxu3  ;;  %v769_v31 = vadd.f32 %v768_v20, %v190_v4  ;;  %v2640_v4 = vld [vmem:[#allocation6 + $0x58] sm:$0xff]  ;;  %v915_v20 = vld [vmem:[%s2888_s4] sm:$0xf] }
  0xe0   :  { %v917_v22 = vperm.slane %v915_v20, 0  ;;  %v918_v29 = vperm.slane %v915_v20, 1 }
  0xe1   :  { %1253 = vmatmul.bf16.vlgmr.msrb.gmra.mxu0 %v849_v61  ;;  %1281 = vmatmul.bf16.vlgmr.msrb.gmra.mxu2 %v849_v61  ;;  %v783_v37 = vadd.f32 %v782_v39, %v769_v31 }
  0xe2   :  { %1637 = vmatpush.bf16.msrb.mxu0 %v2636_v56  ;;  %1665 = vmatpush.bf16.msrb.mxu2 %v2652_v58 }
  0xe6   :  { %1638 = vmatpush.bf16.msrb.mxu0 %v2635_v59  ;;  %1666 = vmatpush.bf16.msrb.mxu2 %v2651_v5 }
  0xea   :  { %1667 = vmatpush.bf16.msrb.mxu2 %v2650_v8 }
  0xee   :  { %v794_v21 = vpop.f32.mrf.mxu0  ;;  %1668 = vmatpush.bf16.msrb.mxu2 %v2649_v13 }
  0xef   :  { %v808_v30 = vpop.f32.mrf.mxu1  ;;  %v795_v32 = vadd.f32 %v794_v21, %v781_v26  ;;  %v2645_v21 = vld [vmem:[#allocation6 + $0x80] sm:$0xff] }
  0xf1   :  { %1309 = vmatmul.bf16.vlgmr.msra.gmra.mxu0 %v849_v61  ;;  %1337 = vmatmul.bf16.vlgmr.msra.gmra.mxu2 %v849_v61  ;;  %v809_v38 = vadd.f32 %v808_v30, %v795_v32  ;;  %v2634_v61 = vld [vmem:[#allocation6 + $0x28] sm:$0xff] }
  0xf2   :  { %1639 = vmatpush.bf16.msrb.mxu0 %v2634_v61  ;;  %1669 = vmatpush.bf16.msrb.mxu2 %v2648_v15 }
  0xf6   :  { %v822_v36 = vpop.f32.mrf.mxu2  ;;  %v796_v41 = vpop.f32.mrf.mxu0  ;;  %1640 = vmatpush.bf16.msrb.mxu0 %v2633_v63  ;;  %1670 = vmatpush.bf16.msrb.mxu2 %v2647_v18 }
  0xf7   :  { %v836_v40 = vpop.f32.mrf.mxu3  ;;  %v823_v42 = vadd.f32 %v822_v36, %v809_v38  ;;  %v797_v43 = vadd.f32 %v796_v41, %v783_v37  ;;  %v810_v44 = vpop.f32.mrf.mxu1 }
  0xf9   :  { %v837_v45 = vadd.f32 %v836_v40, %v823_v42  ;;  %v811_v46 = vadd.f32 %v810_v44, %v797_v43 }
  0xfa   :  { %1641 = vmatpush.bf16.msrb.mxu0 %v2632_v1  ;;  %1671 = vmatpush.bf16.msrb.mxu2 %v2646_v57 }
  0xfb   :  { %v842_v50 = vmul.f32 0.2, %v837_v45 }
  0xfd   :  { %v846_v53 = vmax.f32 %v837_v45, %v842_v50 }
  0xfe   :  { %v824_v47 = vpop.f32.mrf.mxu2  ;;  %1642 = vmatpush.bf16.msrb.mxu0 %v2631_v3  ;;  %1672 = vmatpush.bf16.msrb.mxu2 %v2645_v21 }
  0xff   :  { %v825_v48 = vadd.f32 %v824_v47, %v811_v46  ;;  %v838_v49 = vpop.f32.mrf.mxu3  ;;  %v919_v47 = vperm.slane %v915_v20, 2 }
 0x101   :  { %v839_v51 = vadd.f32 %v838_v49, %v825_v48 }
 0x102   :  { %1643 = vmatpush.bf16.msrb.mxu0 %v2630_v7 }
 0x103   :  { %v844_v52 = vmul.f32 0.2, %v839_v51 }
 0x105   :  { %v848_v54 = vmax.f32 %v839_v51, %v844_v52 }
 0x106   :  { %1644 = vmatpush.bf16.msrb.mxu0 %v2629_v12 }
 0x107   :  { %v850_v55 = vpack.c.bf16 %v848_v54, %v846_v53 }
 0x109   :  { %1267 = vmatmul.bf16.vlgmr.msrb.gmra.mxu1 %v850_v55  ;;  %1295 = vmatmul.bf16.vlgmr.msrb.gmra.mxu3 %v850_v55 }
 0x10a   :  { %1651 = vmatpush.bf16.msrb.mxu1 %v2644_v60  ;;  %1679 = vmatpush.bf16.msrb.mxu3 %v2660_v6  ;;  %v920_v60 = vperm.slane %v915_v20, 3 }
 0x10e   :  { %1652 = vmatpush.bf16.msrb.mxu1 %v2643_v62  ;;  %1680 = vmatpush.bf16.msrb.mxu3 %v2659_v10 }
 0x112   :  { %1653 = vmatpush.bf16.msrb.mxu1 %v2642_v0  ;;  %1681 = vmatpush.bf16.msrb.mxu3 %v2658_v14 }
 0x116   :  { %1654 = vmatpush.bf16.msrb.mxu1 %v2641_v2  ;;  %1682 = vmatpush.bf16.msrb.mxu3 %v2657_v17 }
 0x119   :  { %1323 = vmatmul.bf16.vlgmr.msra.gmra.mxu1 %v850_v55  ;;  %1351 = vmatmul.bf16.vlgmr.msra.gmra.mxu3 %v850_v55 }
 0x11a   :  { %1655 = vmatpush.bf16.msrb.mxu1 %v2640_v4  ;;  %1683 = vmatpush.bf16.msrb.mxu3 %v2656_v19 }
 0x11e   :  { %1656 = vmatpush.bf16.msrb.mxu1 %v2639_v9  ;;  %1684 = vmatpush.bf16.msrb.mxu3 %v2655_v35 }
 0x122   :  { %1657 = vmatpush.bf16.msrb.mxu1 %v2638_v11  ;;  %1685 = vmatpush.bf16.msrb.mxu3 %v2654_v24 }
 0x126   :  { %1658 = vmatpush.bf16.msrb.mxu1 %v2637_v16  ;;  %1686 = vmatpush.bf16.msrb.mxu3 %v2653_v28 }
 0x15e   :  { %v1254_v23 = vpop.f32.mrf.mxu0 }
 0x15f   :  { %v1255_v27 = vadd.f32 %v1254_v23, %v917_v22  ;;  %v2670_v23 = vld [vmem:[%s2890_s6] ss:$0 sm:$0xff] }
 0x164   :  { %v1282_v39 = vpop.f32.mrf.mxu2 }
 0x165   :  { %v1283_v36 = vadd.f32 %v1282_v39, %v918_v29 }
 0x166   :  { %v1256_v25 = vpop.f32.mrf.mxu0 }
 0x167   :  { %v1257_v33 = vadd.f32 %v1256_v25, %v917_v22 }
 0x16c   :  { %v1284_v31 = vpop.f32.mrf.mxu2 }
 0x16d   :  { %v1285_v43 = vadd.f32 %v1284_v31, %v918_v29 }
 0x16e   :  { %v1310_v40 = vpop.f32.mrf.mxu0 }
 0x16f   :  { %v1311_v54 = vadd.f32 %v1310_v40, %v919_v47 }
 0x174   :  { %v1338_v51 = vpop.f32.mrf.mxu2 }
 0x175   :  { %v1339_v58 = vadd.f32 %v1338_v51, %v920_v60 }
 0x176   :  { %v1312_v59 = vpop.f32.mrf.mxu0 }
 0x177   :  { %v1313_v0 = vadd.f32 %v1312_v59, %v919_v47 }
 0x17c   :  { %v1340_v5 = vpop.f32.mrf.mxu2 }
 0x17d   :  { %v1341_v7 = vadd.f32 %v1340_v5, %v920_v60 }
 0x186   :  { %v1268_v26 = vpop.f32.mrf.mxu1 }
 0x187   :  { %v1269_v30 = vadd.f32 %v1268_v26, %v1255_v27 }
 0x189   :  { %v1357_v37 = vmul.f32 0.2, %v1269_v30 }
 0x18b   :  { %v1365_v44 = vmax.f32 %v1269_v30, %v1357_v37 }
 0x18c   :  { %v1296_v32 = vpop.f32.mrf.mxu3 }
 0x18d   :  { %v1297_v41 = vadd.f32 %v1296_v32, %v1283_v36 }
 0x18e   :  { %v1270_v34 = vpop.f32.mrf.mxu1 }
 0x18f   :  { %v1271_v38 = vadd.f32 %v1270_v34, %v1257_v33  ;;  %v1358_v48 = vmul.f32 0.2, %v1297_v41 }
 0x191   :  { %v1361_v42 = vmul.f32 0.2, %v1271_v38  ;;  %v1366_v55 = vmax.f32 %v1297_v41, %v1358_v48 }
 0x193   :  { %v1369_v45 = vmax.f32 %v1271_v38, %v1361_v42 }
 0x194   :  { %v1298_v46 = vpop.f32.mrf.mxu3 }
 0x195   :  { %v1373_v49 = vpack.c.bf16 %v1369_v45, %v1365_v44  ;;  %v1299_v50 = vadd.f32 %v1298_v46, %v1285_v43 }
 0x196   :  { %v1324_v52 = vpop.f32.mrf.mxu1 }
 0x197   :  { %v1362_v53 = vmul.f32 0.2, %v1299_v50  ;;  %1645 = vmatmul.bf16.vlgmr.msrb.gmra.mxu0 %v1373_v49  ;;  %v1325_v62 = vadd.f32 %v1324_v52, %v1311_v54 }
 0x199   :  { %v1370_v56 = vmax.f32 %v1299_v50, %v1362_v53  ;;  %v1359_v2 = vmul.f32 0.2, %v1325_v62 }
 0x19b   :  { %v1374_v61 = vpack.c.bf16 %v1370_v56, %v1366_v55  ;;  %v1367_v8 = vmax.f32 %v1325_v62, %v1359_v2 }
 0x19c   :  { %v1352_v63 = vpop.f32.mrf.mxu3 }
 0x19d   :  { %1659 = vmatmul.bf16.vlgmr.msrb.gmra.mxu1 %v1374_v61  ;;  %v1353_v4 = vadd.f32 %v1352_v63, %v1339_v58 }
 0x19e   :  { %v1326_v1 = vpop.f32.mrf.mxu1 }
 0x19f   :  { %v1327_v3 = vadd.f32 %v1326_v1, %v1313_v0  ;;  %v1360_v12 = vmul.f32 0.2, %v1353_v4 }
 0x1a1   :  { %v1363_v6 = vmul.f32 0.2, %v1327_v3  ;;  %v1368_v15 = vmax.f32 %v1353_v4, %v1360_v12 }
 0x1a3   :  { %v1371_v9 = vmax.f32 %v1327_v3, %v1363_v6 }
 0x1a4   :  { %v1354_v10 = vpop.f32.mrf.mxu3 }
 0x1a5   :  { %v1375_v13 = vpack.c.bf16 %v1371_v9, %v1367_v8  ;;  %v1355_v11 = vadd.f32 %v1354_v10, %v1341_v7 }
 0x1a7   :  { %v1364_v14 = vmul.f32 0.2, %v1355_v11  ;;  %1673 = vmatmul.bf16.vlgmr.msrb.gmra.mxu2 %v1375_v13 }
 0x1a9   :  { %v1372_v16 = vmax.f32 %v1355_v11, %v1364_v14 }
 0x1ab   :  { %v1376_v17 = vpack.c.bf16 %v1372_v16, %v1368_v15 }
 0x1ad   :  { %1687 = vmatmul.bf16.vlgmr.msrb.gmra.mxu3 %v1376_v17 }
 0x214   :  { %v1646_v18 = vpop.f32.mrf.mxu0 }
 0x215   :  { %v1647_v35 = vadd.f32 %v2670_v23, %v1646_v18 }
 0x21a   :  { %v1660_v19 = vpop.f32.mrf.mxu1 }
 0x21b   :  { %v1661_v20 = vadd.f32 %v1660_v19, %v1647_v35 }
 0x21c   :  { %v1648_v21 = vpop.f32.mrf.mxu0 }
 0x21d   :  { %v1649_v26 = vadd.f32 %v2670_v23, %v1648_v21 }
 0x222   :  { %v1662_v25 = vpop.f32.mrf.mxu1 }
 0x223   :  { %v1663_v28 = vadd.f32 %v1662_v25, %v1649_v26 }
 0x22a   :  { %v1674_v57 = vpop.f32.mrf.mxu2 }
 0x22b   :  { %v1675_v39 = vadd.f32 %v1674_v57, %v1661_v20 }
 0x230   :  { %v1688_v22 = vpop.f32.mrf.mxu3 }
 0x231   :  { %v1689_v24 = vadd.f32 %v1688_v22, %v1675_v39 }
 0x232   :  { %v1676_v27 = vpop.f32.mrf.mxu2 }
 0x233   :  { %1693 = vst [vmem:[%s2891_s7] sm:$0xff] %v1689_v24  ;;  %v1677_v29 = vadd.f32 %v1676_v27, %v1663_v28 }
 0x238   :  { %v1690_v30 = vpop.f32.mrf.mxu3 }
 0x239   :  { %v1691_v31 = vadd.f32 %v1690_v30, %v1677_v29 }
 0x23b   :  { %1694 = vst [vmem:[%s2891_s7 + $0x8] sm:$0xff] %v1691_v31 }
 0x23c   :  { %1699 = vsyncpa [#allocation3], 1 }
 0x23d   :  { %1700 = vsyncpa [#allocation5], 1 }

</bundles_post_ra>
